<compile_context>
chip_gen: v6e
topology: v6e:2x2x1
jax: 0.10.0
libtpu: 0.0.40
codegen_flags: <defaults>
</compile_context>

<pallas_src>
import jax
import jax.numpy as jnp
import numpy as np
from jax.experimental import pallas as pl
from jax.experimental.pallas import tpu as pltpu


# ----------------------------------------------------------------------------
# Pallas kernel
# ----------------------------------------------------------------------------
def _make_cell_kernel(N, Din, H, K2, Bt):
    C = Din + H

    def kernel(inp_ref, s_ref, w1_ref, w2_ref, b1_ref, out_ref):
        # inp_ref: (N, Bt*C)   lanes = b_local*C + c ; c<Din -> x, c>=Din -> state
        # s_ref:   (K2*N, N)   stacked Chebyshev supports
        # w1_ref:  (K2*C, 3H)  [gate z | gate r | update (x-rows, state rows zeroed)]
        # w2_ref:  (K2*H, H)   update weights, state rows only
        # b1_ref:  (1, 3H)     [b_gate | b_update]
        # out_ref: (N, Bt*H)
        xs = inp_ref[...]
        S = s_ref[...]
        W1 = w1_ref[...]
        W2 = w2_ref[...]
        b1 = b1_ref[...]

        # ---- fused graph propagation of cat(x, state), all batches & all k ----
        # one (K2*N, N) @ (N, Bt*C) MXU op replaces 2*K2*Bt tiny dots
        P1 = jnp.dot(S, xs, preferred_element_type=jnp.float32)      # (K2*N, Bt*C)

        z_l, r_l, ux_l, st_l, zs_l = [], [], [], [], []
        for b in range(Bt):
            # x_g for batch b: move the K2 row-chunks into the lane dim
            q = jnp.concatenate(
                [P1[k * N:(k + 1) * N, b * C:(b + 1) * C] for k in range(K2)],
                axis=1)                                               # (N, K2*C)
            # gate (z|r) and update-x contribution in ONE wide matmul + fused bias
            a1 = jnp.dot(q, W1, preferred_element_type=jnp.float32) + b1   # (N, 3H)
            z = jax.nn.sigmoid(a1[:, :H])
            r = jax.nn.sigmoid(a1[:, H:2 * H])
            st_b = xs[:, b * C + Din:(b + 1) * C]                     # state[b] (N, H)
            z_l.append(z)
            r_l.append(r)
            ux_l.append(a1[:, 2 * H:])          # update x-part (already has b_upd)
            st_l.append(st_b)
            zs_l.append(z * st_b)

        # ---- fused graph propagation of z*state for all batches ----
        zs_all = jnp.concatenate(zs_l, axis=1)                        # (N, Bt*H)
        P2 = jnp.dot(S, zs_all, preferred_element_type=jnp.float32)   # (K2*N, Bt*H)

        h_l = []
        for b in range(Bt):
            q2 = jnp.concatenate(
                [P2[k * N:(k + 1) * N, b * H:(b + 1) * H] for k in range(K2)],
                axis=1)                                               # (N, K2*H)
            hc = jnp.tanh(ux_l[b] +
                          jnp.dot(q2, W2, preferred_element_type=jnp.float32))
            h_l.append(r_l[b] * st_l[b] + (1.0 - r_l[b]) * hc)

        # single lane-dense (N, Bt*H) store
        out_ref[...] = jnp.concatenate(h_l, axis=1).astype(out_ref.dtype)

    return kernel


# ----------------------------------------------------------------------------
# Wrapper: static re-packing of weights/supports + pallas_call
# ----------------------------------------------------------------------------
def agcrn_cell_pallas(x, state, supports_stacked, w_gate, b_gate, w_upd, b_upd,
                      batch_tile=None):
    B, N, Din = x.shape
    H = state.shape[-1]
    K2 = supports_stacked.shape[0]
    C = Din + H

    if batch_tile is None:
        # aim for ~128 output lanes per grid step, keeping a divisor of B
        target = max(1, 128 // H)
        batch_tile = 1
        for d in range(1, B + 1):
            if B % d == 0 and d <= target:
                batch_tile = d
    assert B % batch_tile == 0, "batch must be divisible by batch_tile"
    Bt = batch_tile
    T = B // Bt

    # ---- static weight / support re-packing (plain JAX glue, done once) ----
    S_flat = supports_stacked.reshape(K2 * N, N)
    w_upd3 = w_upd.reshape(K2, C, H)
    w_upd_x = jnp.concatenate(
        [w_upd3[:, :Din, :], jnp.zeros((K2, H, H), w_upd.dtype)], axis=1
    ).reshape(K2 * C, H)                               # update weights, state rows zeroed
    W1 = jnp.concatenate([w_gate, w_upd_x], axis=1)    # (K2*C, 3H): [z | r | u_x]
    W2 = w_upd3[:, Din:, :].reshape(K2 * H, H)         # update weights, state rows
    b1 = jnp.concatenate([b_gate, b_upd]).reshape(1, 3 * H)

    # fold batch into the lane dim: (T, N, Bt*C), lanes = b_local*C + c
    inp = jnp.concatenate([x, state], axis=-1)         # (B, N, C)
    inp_t = inp.reshape(T, Bt, N, C).transpose(0, 2, 1, 3).reshape(T, N, Bt * C)

    kernel = _make_cell_kernel(N, Din, H, K2, Bt)
    const = lambda shape: pl.BlockSpec(shape, lambda i: (0,) * len(shape))

    out = pl.pallas_call(
        kernel,
        out_shape=jax.ShapeDtypeStruct((T, N, Bt * H), x.dtype),
        grid=(T,),
        in_specs=[
            pl.BlockSpec((None, N, Bt * C), lambda i: (i, 0, 0)),   # batch tile i
            const((K2 * N, N)),        # S_flat   (grid-invariant)
            const((K2 * C, 3 * H)),    # W1       (grid-invariant)
            const((K2 * H, H)),        # W2       (grid-invariant)
            const((1, 3 * H)),         # fused bias
        ],
        out_specs=pl.BlockSpec((None, N, Bt * H), lambda i: (i, 0, 0)),
        compiler_params=pltpu.CompilerParams(dimension_semantics=("parallel",)),
    )(inp_t, S_flat, W1, W2, b1)

    # (T, N, Bt*H) -> (B, N, H)
    return out.reshape(T, N, Bt, H).transpose(0, 2, 1, 3).reshape(B, N, H)


# ----------------------------------------------------------------------------
# Glue: Chebyshev support set & parameter init (mirrors the PyTorch module)
# ----------------------------------------------------------------------------
def build_support_set(supports, cheb_k):
    support_set = []
    for support in supports:
        n = support.shape[0]
        ks = [jnp.eye(n, dtype=support.dtype), support]
        for _ in range(2, cheb_k):
            ks.append(2.0 * support @ ks[-1] - ks[-2])
        support_set.extend(ks)
    return jnp.stack(support_set, axis=0)  # (K2, N, N)


def xavier_normal(key, shape):
    fan_in, fan_out = shape
    std = float(np.sqrt(2.0 / (fan_in + fan_out)))
    return jax.random.normal(key, shape, dtype=jnp.float32) * std


# ----------------------------------------------------------------------------
# Pure-JAX reference (direct transcription of the PyTorch module)
# ----------------------------------------------------------------------------
def ref_agcn(x, supports_stacked, weights, bias):
    x_g = jnp.concatenate(
        [jnp.einsum('nm,bmc->bnc', supports_stacked[k], x)
         for k in range(supports_stacked.shape[0])], axis=-1)
    return jnp.einsum('bni,io->bno', x_g, weights) + bias


def ref_cell(x, state, supports_stacked, w_gate, b_gate, w_upd, b_upd, H):
    inp = jnp.concatenate([x, state], axis=-1)
    z_r = jax.nn.sigmoid(ref_agcn(inp, supports_stacked, w_gate, b_gate))
    z, r = z_r[..., :H], z_r[..., H:]
    cand = jnp.concatenate([x, z * state], axis=-1)
    hc = jnp.tanh(ref_agcn(cand, supports_stacked, w_upd, b_upd))
    return r * state + (1.0 - r) * hc


# ----------------------------------------------------------------------------
# Main
# ----------------------------------------------------------------------------
if __name__ == "__main__":
    B, N, Din, H, cheb_k = 8, 16, 4, 32, 3
    n_supports = 2
    K2 = n_supports * cheb_k
    C = Din + H

    key = jax.random.PRNGKey(0)
    k_x, k_s, k_a1, k_a2, k_wg, k_wu, k_bg, k_bu = jax.random.split(key, 8)

    x = jax.random.normal(k_x, (B, N, Din), dtype=jnp.float32)
    state = jax.random.normal(k_s, (B, N, H), dtype=jnp.float32)

    # Two row-stochastic adaptive adjacency supports (as MegaCRN typically uses).
    adj1 = jax.nn.softmax(jax.random.normal(k_a1, (N, N), dtype=jnp.float32), axis=-1)
    adj2 = jax.nn.softmax(jax.random.normal(k_a2, (N, N), dtype=jnp.float32), axis=-1)
    S = build_support_set([adj1, adj2], cheb_k)        # (K2, N, N)

    # Parameters (xavier-normal weights; PyTorch inits biases to 0, use small
    # nonzero biases here to exercise the fused-bias path).
    w_gate = xavier_normal(k_wg, (K2 * C, 2 * H))
    w_upd = xavier_normal(k_wu, (K2 * C, H))
    b_gate = 0.1 * jax.random.normal(k_bg, (2 * H,), dtype=jnp.float32)
    b_upd = 0.1 * jax.random.normal(k_bu, (H,), dtype=jnp.float32)

    h = agcrn_cell_pallas(x, state, S, w_gate, b_gate, w_upd, b_upd)
    h = jax.block_until_ready(h)

    h_ref = ref_cell(x, state, S, w_gate, b_gate, w_upd, b_upd, H)
    np.testing.assert_allclose(np.asarray(h), np.asarray(h_ref), rtol=1e-4, atol=1e-5)

    print("KERNEL_OK")
</pallas_src>

<mosaic_0001>
module attributes {stable_mosaic.version = 11 : i64} {
  func.func @kernel(%arg0: i32, %arg1: memref<1x16x144xf32, #tpu.memory_space<vmem>>, %arg2: memref<96x16xf32, #tpu.memory_space<vmem>>, %arg3: memref<216x96xf32, #tpu.memory_space<vmem>>, %arg4: memref<192x32xf32, #tpu.memory_space<vmem>>, %arg5: memref<1x96xf32, #tpu.memory_space<vmem>>, %arg6: memref<1x16x128xf32, #tpu.memory_space<vmem>>) attributes {dimension_semantics = [#tpu.dimension_semantics<parallel>], iteration_bounds = array<i64: 2>, scalar_prefetch = 0 : i64, scratch_operands = 0 : i64, tpu.core_type = #tpu.core_type<tc>, window_params = [{transform_indices = @transform_0, window_bounds = array<i64: 1, 16, 144>}, {pipeline_mode = #tpu.pipeline_mode<synchronous>, transform_indices = @transform_1, window_bounds = array<i64: 96, 16>}, {pipeline_mode = #tpu.pipeline_mode<synchronous>, transform_indices = @transform_2, window_bounds = array<i64: 216, 96>}, {pipeline_mode = #tpu.pipeline_mode<synchronous>, transform_indices = @transform_3, window_bounds = array<i64: 192, 32>}, {pipeline_mode = #tpu.pipeline_mode<synchronous>, transform_indices = @transform_4, window_bounds = array<i64: 1, 96>}, {transform_indices = @transform_5, window_bounds = array<i64: 1, 16, 128>}]} {
    %c0 = arith.constant 0 : index
    %c0_0 = arith.constant 0 : index
    %c0_1 = arith.constant 0 : index
    %0 = vector.load %arg1[%c0, %c0_0, %c0_1] : memref<1x16x144xf32, #tpu.memory_space<vmem>>, vector<1x16x144xf32>
    %1 = vector.shape_cast %0 : vector<1x16x144xf32> to vector<16x144xf32>
    %c0_2 = arith.constant 0 : index
    %c0_3 = arith.constant 0 : index
    %2 = vector.load %arg2[%c0_2, %c0_3] : memref<96x16xf32, #tpu.memory_space<vmem>>, vector<96x16xf32>
    %c0_4 = arith.constant 0 : index
    %c0_5 = arith.constant 0 : index
    %3 = vector.load %arg3[%c0_4, %c0_5] : memref<216x96xf32, #tpu.memory_space<vmem>>, vector<216x96xf32>
    %c0_6 = arith.constant 0 : index
    %c0_7 = arith.constant 0 : index
    %4 = vector.load %arg4[%c0_6, %c0_7] : memref<192x32xf32, #tpu.memory_space<vmem>>, vector<192x32xf32>
    %c0_8 = arith.constant 0 : index
    %c0_9 = arith.constant 0 : index
    %5 = vector.load %arg5[%c0_8, %c0_9] : memref<1x96xf32, #tpu.memory_space<vmem>>, vector<1x96xf32>
    %cst = arith.constant dense<0.000000e+00> : vector<96x144xf32>
    %6 = tpu.matmul %2, %1, %cst {dimension_numbers = #tpu.dot_dimension_numbers<[1], [0], [0], [1], [0, 0, 1, 1], [], []>} : vector<96x16xf32>, vector<16x144xf32>, vector<96x144xf32> -> vector<96x144xf32>
    %7 = vector.extract_strided_slice %6 {offsets = [0, 0], sizes = [16, 36], strides = [1, 1]} : vector<96x144xf32> to vector<16x36xf32>
    %8 = vector.extract_strided_slice %6 {offsets = [16, 0], sizes = [16, 36], strides = [1, 1]} : vector<96x144xf32> to vector<16x36xf32>
    %9 = vector.extract_strided_slice %6 {offsets = [32, 0], sizes = [16, 36], strides = [1, 1]} : vector<96x144xf32> to vector<16x36xf32>
    %10 = vector.extract_strided_slice %6 {offsets = [48, 0], sizes = [16, 36], strides = [1, 1]} : vector<96x144xf32> to vector<16x36xf32>
    %11 = vector.extract_strided_slice %6 {offsets = [64, 0], sizes = [16, 36], strides = [1, 1]} : vector<96x144xf32> to vector<16x36xf32>
    %12 = vector.extract_strided_slice %6 {offsets = [80, 0], sizes = [16, 36], strides = [1, 1]} : vector<96x144xf32> to vector<16x36xf32>
    %13 = tpu.concatenate %7, %8, %9, %10, %11, %12 in 1 : vector<16x36xf32>, vector<16x36xf32>, vector<16x36xf32>, vector<16x36xf32>, vector<16x36xf32>, vector<16x36xf32> -> vector<16x216xf32>
    %cst_10 = arith.constant dense<0.000000e+00> : vector<16x96xf32>
    %14 = tpu.matmul %13, %3, %cst_10 {dimension_numbers = #tpu.dot_dimension_numbers<[1], [0], [0], [1], [0, 0, 1, 1], [], []>} : vector<16x216xf32>, vector<216x96xf32>, vector<16x96xf32> -> vector<16x96xf32>
    %15 = vector.broadcast %5 : vector<1x96xf32> to vector<16x96xf32>
    %16 = arith.addf %14, %15 : vector<16x96xf32>
    %17 = vector.extract_strided_slice %16 {offsets = [0, 0], sizes = [16, 32], strides = [1, 1]} : vector<16x96xf32> to vector<16x32xf32>
    %18 = arith.negf %17 : vector<16x32xf32>
    %19 = math.exp %18 : vector<16x32xf32>
    %cst_11 = arith.constant 1.000000e+00 : f32
    %20 = vector.broadcast %cst_11 : f32 to vector<16x32xf32>
    %21 = arith.addf %20, %19 : vector<16x32xf32>
    %22 = arith.divf %20, %21 : vector<16x32xf32>
    %23 = vector.extract_strided_slice %16 {offsets = [0, 32], sizes = [16, 32], strides = [1, 1]} : vector<16x96xf32> to vector<16x32xf32>
    %24 = arith.negf %23 : vector<16x32xf32>
    %25 = math.exp %24 : vector<16x32xf32>
    %cst_12 = arith.constant 1.000000e+00 : f32
    %26 = vector.broadcast %cst_12 : f32 to vector<16x32xf32>
    %27 = arith.addf %26, %25 : vector<16x32xf32>
    %28 = arith.divf %26, %27 : vector<16x32xf32>
    %29 = vector.extract_strided_slice %1 {offsets = [0, 4], sizes = [16, 32], strides = [1, 1]} : vector<16x144xf32> to vector<16x32xf32>
    %30 = vector.extract_strided_slice %16 {offsets = [0, 64], sizes = [16, 32], strides = [1, 1]} : vector<16x96xf32> to vector<16x32xf32>
    %31 = arith.mulf %22, %29 : vector<16x32xf32>
    %32 = vector.extract_strided_slice %6 {offsets = [0, 36], sizes = [16, 36], strides = [1, 1]} : vector<96x144xf32> to vector<16x36xf32>
    %33 = vector.extract_strided_slice %6 {offsets = [16, 36], sizes = [16, 36], strides = [1, 1]} : vector<96x144xf32> to vector<16x36xf32>
    %34 = vector.extract_strided_slice %6 {offsets = [32, 36], sizes = [16, 36], strides = [1, 1]} : vector<96x144xf32> to vector<16x36xf32>
    %35 = vector.extract_strided_slice %6 {offsets = [48, 36], sizes = [16, 36], strides = [1, 1]} : vector<96x144xf32> to vector<16x36xf32>
    %36 = vector.extract_strided_slice %6 {offsets = [64, 36], sizes = [16, 36], strides = [1, 1]} : vector<96x144xf32> to vector<16x36xf32>
    %37 = vector.extract_strided_slice %6 {offsets = [80, 36], sizes = [16, 36], strides = [1, 1]} : vector<96x144xf32> to vector<16x36xf32>
    %38 = tpu.concatenate %32, %33, %34, %35, %36, %37 in 1 : vector<16x36xf32>, vector<16x36xf32>, vector<16x36xf32>, vector<16x36xf32>, vector<16x36xf32>, vector<16x36xf32> -> vector<16x216xf32>
    %cst_13 = arith.constant dense<0.000000e+00> : vector<16x96xf32>
    %39 = tpu.matmul %38, %3, %cst_13 {dimension_numbers = #tpu.dot_dimension_numbers<[1], [0], [0], [1], [0, 0, 1, 1], [], []>} : vector<16x216xf32>, vector<216x96xf32>, vector<16x96xf32> -> vector<16x96xf32>
    %40 = vector.broadcast %5 : vector<1x96xf32> to vector<16x96xf32>
    %41 = arith.addf %39, %40 : vector<16x96xf32>
    %42 = vector.extract_strided_slice %41 {offsets = [0, 0], sizes = [16, 32], strides = [1, 1]} : vector<16x96xf32> to vector<16x32xf32>
    %43 = arith.negf %42 : vector<16x32xf32>
    %44 = math.exp %43 : vector<16x32xf32>
    %cst_14 = arith.constant 1.000000e+00 : f32
    %45 = vector.broadcast %cst_14 : f32 to vector<16x32xf32>
    %46 = arith.addf %45, %44 : vector<16x32xf32>
    %47 = arith.divf %45, %46 : vector<16x32xf32>
    %48 = vector.extract_strided_slice %41 {offsets = [0, 32], sizes = [16, 32], strides = [1, 1]} : vector<16x96xf32> to vector<16x32xf32>
    %49 = arith.negf %48 : vector<16x32xf32>
    %50 = math.exp %49 : vector<16x32xf32>
    %cst_15 = arith.constant 1.000000e+00 : f32
    %51 = vector.broadcast %cst_15 : f32 to vector<16x32xf32>
    %52 = arith.addf %51, %50 : vector<16x32xf32>
    %53 = arith.divf %51, %52 : vector<16x32xf32>
    %54 = vector.extract_strided_slice %1 {offsets = [0, 40], sizes = [16, 32], strides = [1, 1]} : vector<16x144xf32> to vector<16x32xf32>
    %55 = vector.extract_strided_slice %41 {offsets = [0, 64], sizes = [16, 32], strides = [1, 1]} : vector<16x96xf32> to vector<16x32xf32>
    %56 = arith.mulf %47, %54 : vector<16x32xf32>
    %57 = vector.extract_strided_slice %6 {offsets = [0, 72], sizes = [16, 36], strides = [1, 1]} : vector<96x144xf32> to vector<16x36xf32>
    %58 = vector.extract_strided_slice %6 {offsets = [16, 72], sizes = [16, 36], strides = [1, 1]} : vector<96x144xf32> to vector<16x36xf32>
    %59 = vector.extract_strided_slice %6 {offsets = [32, 72], sizes = [16, 36], strides = [1, 1]} : vector<96x144xf32> to vector<16x36xf32>
    %60 = vector.extract_strided_slice %6 {offsets = [48, 72], sizes = [16, 36], strides = [1, 1]} : vector<96x144xf32> to vector<16x36xf32>
    %61 = vector.extract_strided_slice %6 {offsets = [64, 72], sizes = [16, 36], strides = [1, 1]} : vector<96x144xf32> to vector<16x36xf32>
    %62 = vector.extract_strided_slice %6 {offsets = [80, 72], sizes = [16, 36], strides = [1, 1]} : vector<96x144xf32> to vector<16x36xf32>
    %63 = tpu.concatenate %57, %58, %59, %60, %61, %62 in 1 : vector<16x36xf32>, vector<16x36xf32>, vector<16x36xf32>, vector<16x36xf32>, vector<16x36xf32>, vector<16x36xf32> -> vector<16x216xf32>
    %cst_16 = arith.constant dense<0.000000e+00> : vector<16x96xf32>
    %64 = tpu.matmul %63, %3, %cst_16 {dimension_numbers = #tpu.dot_dimension_numbers<[1], [0], [0], [1], [0, 0, 1, 1], [], []>} : vector<16x216xf32>, vector<216x96xf32>, vector<16x96xf32> -> vector<16x96xf32>
    %65 = vector.broadcast %5 : vector<1x96xf32> to vector<16x96xf32>
    %66 = arith.addf %64, %65 : vector<16x96xf32>
    %67 = vector.extract_strided_slice %66 {offsets = [0, 0], sizes = [16, 32], strides = [1, 1]} : vector<16x96xf32> to vector<16x32xf32>
    %68 = arith.negf %67 : vector<16x32xf32>
    %69 = math.exp %68 : vector<16x32xf32>
    %cst_17 = arith.constant 1.000000e+00 : f32
    %70 = vector.broadcast %cst_17 : f32 to vector<16x32xf32>
    %71 = arith.addf %70, %69 : vector<16x32xf32>
    %72 = arith.divf %70, %71 : vector<16x32xf32>
    %73 = vector.extract_strided_slice %66 {offsets = [0, 32], sizes = [16, 32], strides = [1, 1]} : vector<16x96xf32> to vector<16x32xf32>
    %74 = arith.negf %73 : vector<16x32xf32>
    %75 = math.exp %74 : vector<16x32xf32>
    %cst_18 = arith.constant 1.000000e+00 : f32
    %76 = vector.broadcast %cst_18 : f32 to vector<16x32xf32>
    %77 = arith.addf %76, %75 : vector<16x32xf32>
    %78 = arith.divf %76, %77 : vector<16x32xf32>
    %79 = vector.extract_strided_slice %1 {offsets = [0, 76], sizes = [16, 32], strides = [1, 1]} : vector<16x144xf32> to vector<16x32xf32>
    %80 = vector.extract_strided_slice %66 {offsets = [0, 64], sizes = [16, 32], strides = [1, 1]} : vector<16x96xf32> to vector<16x32xf32>
    %81 = arith.mulf %72, %79 : vector<16x32xf32>
    %82 = vector.extract_strided_slice %6 {offsets = [0, 108], sizes = [16, 36], strides = [1, 1]} : vector<96x144xf32> to vector<16x36xf32>
    %83 = vector.extract_strided_slice %6 {offsets = [16, 108], sizes = [16, 36], strides = [1, 1]} : vector<96x144xf32> to vector<16x36xf32>
    %84 = vector.extract_strided_slice %6 {offsets = [32, 108], sizes = [16, 36], strides = [1, 1]} : vector<96x144xf32> to vector<16x36xf32>
    %85 = vector.extract_strided_slice %6 {offsets = [48, 108], sizes = [16, 36], strides = [1, 1]} : vector<96x144xf32> to vector<16x36xf32>
    %86 = vector.extract_strided_slice %6 {offsets = [64, 108], sizes = [16, 36], strides = [1, 1]} : vector<96x144xf32> to vector<16x36xf32>
    %87 = vector.extract_strided_slice %6 {offsets = [80, 108], sizes = [16, 36], strides = [1, 1]} : vector<96x144xf32> to vector<16x36xf32>
    %88 = tpu.concatenate %82, %83, %84, %85, %86, %87 in 1 : vector<16x36xf32>, vector<16x36xf32>, vector<16x36xf32>, vector<16x36xf32>, vector<16x36xf32>, vector<16x36xf32> -> vector<16x216xf32>
    %cst_19 = arith.constant dense<0.000000e+00> : vector<16x96xf32>
    %89 = tpu.matmul %88, %3, %cst_19 {dimension_numbers = #tpu.dot_dimension_numbers<[1], [0], [0], [1], [0, 0, 1, 1], [], []>} : vector<16x216xf32>, vector<216x96xf32>, vector<16x96xf32> -> vector<16x96xf32>
    %90 = vector.broadcast %5 : vector<1x96xf32> to vector<16x96xf32>
    %91 = arith.addf %89, %90 : vector<16x96xf32>
    %92 = vector.extract_strided_slice %91 {offsets = [0, 0], sizes = [16, 32], strides = [1, 1]} : vector<16x96xf32> to vector<16x32xf32>
    %93 = arith.negf %92 : vector<16x32xf32>
    %94 = math.exp %93 : vector<16x32xf32>
    %cst_20 = arith.constant 1.000000e+00 : f32
    %95 = vector.broadcast %cst_20 : f32 to vector<16x32xf32>
    %96 = arith.addf %95, %94 : vector<16x32xf32>
    %97 = arith.divf %95, %96 : vector<16x32xf32>
    %98 = vector.extract_strided_slice %91 {offsets = [0, 32], sizes = [16, 32], strides = [1, 1]} : vector<16x96xf32> to vector<16x32xf32>
    %99 = arith.negf %98 : vector<16x32xf32>
    %100 = math.exp %99 : vector<16x32xf32>
    %cst_21 = arith.constant 1.000000e+00 : f32
    %101 = vector.broadcast %cst_21 : f32 to vector<16x32xf32>
    %102 = arith.addf %101, %100 : vector<16x32xf32>
    %103 = arith.divf %101, %102 : vector<16x32xf32>
    %104 = vector.extract_strided_slice %1 {offsets = [0, 112], sizes = [16, 32], strides = [1, 1]} : vector<16x144xf32> to vector<16x32xf32>
    %105 = vector.extract_strided_slice %91 {offsets = [0, 64], sizes = [16, 32], strides = [1, 1]} : vector<16x96xf32> to vector<16x32xf32>
    %106 = arith.mulf %97, %104 : vector<16x32xf32>
    %107 = tpu.concatenate %31, %56, %81, %106 in 1 : vector<16x32xf32>, vector<16x32xf32>, vector<16x32xf32>, vector<16x32xf32> -> vector<16x128xf32>
    %cst_22 = arith.constant dense<0.000000e+00> : vector<96x128xf32>
    %108 = tpu.matmul %2, %107, %cst_22 {dimension_numbers = #tpu.dot_dimension_numbers<[1], [0], [0], [1], [0, 0, 1, 1], [], []>} : vector<96x16xf32>, vector<16x128xf32>, vector<96x128xf32> -> vector<96x128xf32>
    %109 = vector.extract_strided_slice %108 {offsets = [0, 0], sizes = [16, 32], strides = [1, 1]} : vector<96x128xf32> to vector<16x32xf32>
    %110 = vector.extract_strided_slice %108 {offsets = [16, 0], sizes = [16, 32], strides = [1, 1]} : vector<96x128xf32> to vector<16x32xf32>
    %111 = vector.extract_strided_slice %108 {offsets = [32, 0], sizes = [16, 32], strides = [1, 1]} : vector<96x128xf32> to vector<16x32xf32>
    %112 = vector.extract_strided_slice %108 {offsets = [48, 0], sizes = [16, 32], strides = [1, 1]} : vector<96x128xf32> to vector<16x32xf32>
    %113 = vector.extract_strided_slice %108 {offsets = [64, 0], sizes = [16, 32], strides = [1, 1]} : vector<96x128xf32> to vector<16x32xf32>
    %114 = vector.extract_strided_slice %108 {offsets = [80, 0], sizes = [16, 32], strides = [1, 1]} : vector<96x128xf32> to vector<16x32xf32>
    %115 = tpu.concatenate %109, %110, %111, %112, %113, %114 in 1 : vector<16x32xf32>, vector<16x32xf32>, vector<16x32xf32>, vector<16x32xf32>, vector<16x32xf32>, vector<16x32xf32> -> vector<16x192xf32>
    %cst_23 = arith.constant dense<0.000000e+00> : vector<16x32xf32>
    %116 = tpu.matmul %115, %4, %cst_23 {dimension_numbers = #tpu.dot_dimension_numbers<[1], [0], [0], [1], [0, 0, 1, 1], [], []>} : vector<16x192xf32>, vector<192x32xf32>, vector<16x32xf32> -> vector<16x32xf32>
    %117 = arith.addf %30, %116 : vector<16x32xf32>
    %118 = math.tanh %117 : vector<16x32xf32>
    %119 = arith.mulf %28, %29 : vector<16x32xf32>
    %cst_24 = arith.constant 1.000000e+00 : f32
    %120 = vector.broadcast %cst_24 : f32 to vector<16x32xf32>
    %121 = arith.subf %120, %28 : vector<16x32xf32>
    %122 = arith.mulf %121, %118 : vector<16x32xf32>
    %123 = arith.addf %119, %122 : vector<16x32xf32>
    %124 = vector.extract_strided_slice %108 {offsets = [0, 32], sizes = [16, 32], strides = [1, 1]} : vector<96x128xf32> to vector<16x32xf32>
    %125 = vector.extract_strided_slice %108 {offsets = [16, 32], sizes = [16, 32], strides = [1, 1]} : vector<96x128xf32> to vector<16x32xf32>
    %126 = vector.extract_strided_slice %108 {offsets = [32, 32], sizes = [16, 32], strides = [1, 1]} : vector<96x128xf32> to vector<16x32xf32>
    %127 = vector.extract_strided_slice %108 {offsets = [48, 32], sizes = [16, 32], strides = [1, 1]} : vector<96x128xf32> to vector<16x32xf32>
    %128 = vector.extract_strided_slice %108 {offsets = [64, 32], sizes = [16, 32], strides = [1, 1]} : vector<96x128xf32> to vector<16x32xf32>
    %129 = vector.extract_strided_slice %108 {offsets = [80, 32], sizes = [16, 32], strides = [1, 1]} : vector<96x128xf32> to vector<16x32xf32>
    %130 = tpu.concatenate %124, %125, %126, %127, %128, %129 in 1 : vector<16x32xf32>, vector<16x32xf32>, vector<16x32xf32>, vector<16x32xf32>, vector<16x32xf32>, vector<16x32xf32> -> vector<16x192xf32>
    %cst_25 = arith.constant dense<0.000000e+00> : vector<16x32xf32>
    %131 = tpu.matmul %130, %4, %cst_25 {dimension_numbers = #tpu.dot_dimension_numbers<[1], [0], [0], [1], [0, 0, 1, 1], [], []>} : vector<16x192xf32>, vector<192x32xf32>, vector<16x32xf32> -> vector<16x32xf32>
    %132 = arith.addf %55, %131 : vector<16x32xf32>
    %133 = math.tanh %132 : vector<16x32xf32>
    %134 = arith.mulf %53, %54 : vector<16x32xf32>
    %cst_26 = arith.constant 1.000000e+00 : f32
    %135 = vector.broadcast %cst_26 : f32 to vector<16x32xf32>
    %136 = arith.subf %135, %53 : vector<16x32xf32>
    %137 = arith.mulf %136, %133 : vector<16x32xf32>
    %138 = arith.addf %134, %137 : vector<16x32xf32>
    %139 = vector.extract_strided_slice %108 {offsets = [0, 64], sizes = [16, 32], strides = [1, 1]} : vector<96x128xf32> to vector<16x32xf32>
    %140 = vector.extract_strided_slice %108 {offsets = [16, 64], sizes = [16, 32], strides = [1, 1]} : vector<96x128xf32> to vector<16x32xf32>
    %141 = vector.extract_strided_slice %108 {offsets = [32, 64], sizes = [16, 32], strides = [1, 1]} : vector<96x128xf32> to vector<16x32xf32>
    %142 = vector.extract_strided_slice %108 {offsets = [48, 64], sizes = [16, 32], strides = [1, 1]} : vector<96x128xf32> to vector<16x32xf32>
    %143 = vector.extract_strided_slice %108 {offsets = [64, 64], sizes = [16, 32], strides = [1, 1]} : vector<96x128xf32> to vector<16x32xf32>
    %144 = vector.extract_strided_slice %108 {offsets = [80, 64], sizes = [16, 32], strides = [1, 1]} : vector<96x128xf32> to vector<16x32xf32>
    %145 = tpu.concatenate %139, %140, %141, %142, %143, %144 in 1 : vector<16x32xf32>, vector<16x32xf32>, vector<16x32xf32>, vector<16x32xf32>, vector<16x32xf32>, vector<16x32xf32> -> vector<16x192xf32>
    %cst_27 = arith.constant dense<0.000000e+00> : vector<16x32xf32>
    %146 = tpu.matmul %145, %4, %cst_27 {dimension_numbers = #tpu.dot_dimension_numbers<[1], [0], [0], [1], [0, 0, 1, 1], [], []>} : vector<16x192xf32>, vector<192x32xf32>, vector<16x32xf32> -> vector<16x32xf32>
    %147 = arith.addf %80, %146 : vector<16x32xf32>
    %148 = math.tanh %147 : vector<16x32xf32>
    %149 = arith.mulf %78, %79 : vector<16x32xf32>
    %cst_28 = arith.constant 1.000000e+00 : f32
    %150 = vector.broadcast %cst_28 : f32 to vector<16x32xf32>
    %151 = arith.subf %150, %78 : vector<16x32xf32>
    %152 = arith.mulf %151, %148 : vector<16x32xf32>
    %153 = arith.addf %149, %152 : vector<16x32xf32>
    %154 = vector.extract_strided_slice %108 {offsets = [0, 96], sizes = [16, 32], strides = [1, 1]} : vector<96x128xf32> to vector<16x32xf32>
    %155 = vector.extract_strided_slice %108 {offsets = [16, 96], sizes = [16, 32], strides = [1, 1]} : vector<96x128xf32> to vector<16x32xf32>
    %156 = vector.extract_strided_slice %108 {offsets = [32, 96], sizes = [16, 32], strides = [1, 1]} : vector<96x128xf32> to vector<16x32xf32>
    %157 = vector.extract_strided_slice %108 {offsets = [48, 96], sizes = [16, 32], strides = [1, 1]} : vector<96x128xf32> to vector<16x32xf32>
    %158 = vector.extract_strided_slice %108 {offsets = [64, 96], sizes = [16, 32], strides = [1, 1]} : vector<96x128xf32> to vector<16x32xf32>
    %159 = vector.extract_strided_slice %108 {offsets = [80, 96], sizes = [16, 32], strides = [1, 1]} : vector<96x128xf32> to vector<16x32xf32>
    %160 = tpu.concatenate %154, %155, %156, %157, %158, %159 in 1 : vector<16x32xf32>, vector<16x32xf32>, vector<16x32xf32>, vector<16x32xf32>, vector<16x32xf32>, vector<16x32xf32> -> vector<16x192xf32>
    %cst_29 = arith.constant dense<0.000000e+00> : vector<16x32xf32>
    %161 = tpu.matmul %160, %4, %cst_29 {dimension_numbers = #tpu.dot_dimension_numbers<[1], [0], [0], [1], [0, 0, 1, 1], [], []>} : vector<16x192xf32>, vector<192x32xf32>, vector<16x32xf32> -> vector<16x32xf32>
    %162 = arith.addf %105, %161 : vector<16x32xf32>
    %163 = math.tanh %162 : vector<16x32xf32>
    %164 = arith.mulf %103, %104 : vector<16x32xf32>
    %cst_30 = arith.constant 1.000000e+00 : f32
    %165 = vector.broadcast %cst_30 : f32 to vector<16x32xf32>
    %166 = arith.subf %165, %103 : vector<16x32xf32>
    %167 = arith.mulf %166, %163 : vector<16x32xf32>
    %168 = arith.addf %164, %167 : vector<16x32xf32>
    %169 = tpu.concatenate %123, %138, %153, %168 in 1 : vector<16x32xf32>, vector<16x32xf32>, vector<16x32xf32>, vector<16x32xf32> -> vector<16x128xf32>
    %c0_31 = arith.constant 0 : index
    %c0_32 = arith.constant 0 : index
    %c0_33 = arith.constant 0 : index
    %170 = vector.load %arg6[%c0_31, %c0_32, %c0_33] : memref<1x16x128xf32, #tpu.memory_space<vmem>>, vector<1x16x128xf32>
    %171 = vector.shape_cast %170 : vector<1x16x128xf32> to vector<16x128xf32>
    %172 = vector.shape_cast %169 : vector<16x128xf32> to vector<1x16x128xf32>
    tpu.vector_store %arg6[%c0_31, %c0_32, %c0_33], %172 {strides = array<i32>} : memref<1x16x128xf32, #tpu.memory_space<vmem>>, vector<1x16x128xf32>,
    return
  }
  func.func @transform_0(%arg0: i32) -> (i32, i32, i32) {
    %c0_i32 = arith.constant 0 : i32
    %c0_i32_0 = arith.constant 0 : i32
    %c0_i32_1 = arith.constant 0 : i32
    return %arg0, %c0_i32, %c0_i32_0 : i32, i32, i32
  }
  func.func @transform_1(%arg0: i32) -> (i32, i32) {
    %c0_i32 = arith.constant 0 : i32
    %c0_i32_0 = arith.constant 0 : i32
    %c0_i32_1 = arith.constant 0 : i32
    return %c0_i32, %c0_i32_0 : i32, i32
  }
  func.func @transform_2(%arg0: i32) -> (i32, i32) {
    %c0_i32 = arith.constant 0 : i32
    %c0_i32_0 = arith.constant 0 : i32
    %c0_i32_1 = arith.constant 0 : i32
    return %c0_i32, %c0_i32_0 : i32, i32
  }
  func.func @transform_3(%arg0: i32) -> (i32, i32) {
    %c0_i32 = arith.constant 0 : i32
    %c0_i32_0 = arith.constant 0 : i32
    %c0_i32_1 = arith.constant 0 : i32
    return %c0_i32, %c0_i32_0 : i32, i32
  }
  func.func @transform_4(%arg0: i32) -> (i32, i32) {
    %c0_i32 = arith.constant 0 : i32
    %c0_i32_0 = arith.constant 0 : i32
    %c0_i32_1 = arith.constant 0 : i32
    return %c0_i32, %c0_i32_0 : i32, i32
  }
  func.func @transform_5(%arg0: i32) -> (i32, i32, i32) {
    %c0_i32 = arith.constant 0 : i32
    %c0_i32_0 = arith.constant 0 : i32
    %c0_i32_1 = arith.constant 0 : i32
    return %arg0, %c0_i32, %c0_i32_0 : i32, i32, i32
  }
}

</mosaic_0001>

<bundles_post_ra>
// kernel: tpu_custom_call.1
= control target key start
LH: loop header
LB: loop body
LE: loop exit
PB: predicated region body
PF: predicated region fallthrough
CT: control target
= control target key end

     0   :  { %10 = vsyncpa [#allocation3], 0  ;;  %s3859_s0 = inlined_call_operand.vmem [shape: f32[2,16,144], index: 0, kind: input, shape index: {}]   ;;  %s3860_s1 = inlined_call_operand.vmem [shape: f32[96,16], index: 1, kind: input, shape index: {}]   ;;  %s3861_s2 = inlined_call_operand.vmem [shape: f32[216,96], index: 2, kind: input, shape index: {}]   ;;  %s3862_s3 = inlined_call_operand.vmem [shape: f32[192,32], index: 3, kind: input, shape index: {}]   ;;  %s3863_s4 = inlined_call_operand.vmem [shape: f32[1,96], index: 4, kind: input, shape index: {}]   ;;  %s3864_s5 = inlined_call_operand.hbm [shape: f32[2,16,128], index: 5, kind: output, shape index: {}]  }
   0x1   :  { %12 = vsyncpa [#allocation3 + $0x1], 0  ;;  %s2444_s18 = smov 0   ;;  %s2446_s19 = smov 0  }
   0x2   :  { %s2448_s20 = smov 0   ;;  %s2450_s21 = smov 0  }
   0x3 LB: > { %s2465_s22 = sadd.s32 4294967295, %s2391_s21   ;;  %s1990_s23 = sadd.s32 4294967294, %s2391_s21   ;;  %s2391_s21 = sphi %s2450_s21, %s3889_s21   ;;  %s2387_s20 = sphi %s2448_s20, %s3888_s20   ;;  %s2383_s19 = sphi %s2446_s19, %s3887_s19   ;;  %s2379_s18 = sphi %s2444_s18, %s3886_s18  }
   0x4   : > { %s2469_s24 = sadd.s32 1, %s2391_s21   ;;  %s135_s25 = sadd.s32 1, %s2387_s20 }
   0x5   : > { %s132_s26 = ssub.s32 %s2391_s21, %s2469_s24  ;;  %p145_p0 = scmp.ne.s32.totalorder %s2387_s20, %s2383_s19 }
   0x6   : > { %p133_p1 = scmp.eq.s32.totalorder %s132_s26, 0  ;;  %p146_p2 = scmp.eq.s32.totalorder %s2465_s22, 1 }
   0x7   : > { %p151_p3 = scmp.ne.s32.totalorder %s2383_s19, %s2379_s18  ;;  %p152_p4 = scmp.eq.s32.totalorder %s1990_s23, 1 }
   0x8   : > { %s2480_s27 = scalar_select %p133_p1, %s2387_s20, %s135_s25  }
   0x9   : > { %p2482_p5 = por %p146_p2, %p145_p0  ;;  %p2486_p6 = por %p152_p4, %p151_p3 }
   0xa   : > { %p1993_p7 = scmp.ge.s32.totalorder %s2391_s21, 1  ;;  %p190_p8 = scmp.lt.s32.totalorder %s2391_s21, 3 }
   0xc   : > { %p191_p9 = pnand %p1993_p7, %p190_p8 }
   0xe   : > { %194 = sbr.rel (%p191_p9) target bundleno = 1762 (0x6e2), region = 40 }
  0x13   : > { %p218_p10 = scmp.lt.s32.totalorder %s2465_s22, 1  ;;  %v3865_v0 = vmov 0.0   ;;  %v2518_v5 = vld [vmem:[%s3860_s1] sm:$0xff]  ;;  %vm291_vm0 = vcmask 130048   ;;  %v228_v6 = vld [vmem:[%s3860_s1 + $0x8] sm:$0xff]  ;;  %v229_v7 = vld [vmem:[%s3860_s1 + $0x10] sm:$0xff] }
  0x14   : > { %392 = vmatprep.mubr.f32.mxu0 %v3865_v0  ;;  %532 = vmatprep.subr.mxu1 %v3865_v0  ;;  %v230_v8 = vld [vmem:[%s3860_s1 + $0x18] sm:$0xff]  ;;  %v231_v9 = vld [vmem:[%s3860_s1 + $0x20] sm:$0xff]  ;;  %v232_v10 = vld [vmem:[%s3860_s1 + $0x28] sm:$0xff]  ;;  %s2394_s7 = smov 92   ;;  %s2395_s25 = smov 36   ;;  %vm505_vm1 = vcmask 293888  }
  0x15   : > { %s219_s30 = scalar_select %p218_p10, %s2465_s22, 1  ;;  %v233_v11 = vld [vmem:[%s3860_s1 + $0x30] sm:$0xff]  ;;  %v234_v12 = vld [vmem:[%s3860_s1 + $0x38] sm:$0xff]  ;;  %v235_v13 = vld [vmem:[%s3860_s1 + $0x40] sm:$0xff]  ;;  %vm508_vm2 = vcmask 588800   ;;  %vm516_vm3 = vcmask 424960  }
  0x16   : > { %v236_v14 = vld [vmem:[%s3860_s1 + $0x48] sm:$0xff]  ;;  %v237_v15 = vld [vmem:[%s3860_s1 + $0x50] sm:$0xff]  ;;  %v238_v16 = vld [vmem:[%s3860_s1 + $0x58] sm:$0xff]  ;;  %s2396_s10 = smov 72   ;;  %s2397_s15 = smov 108   ;;  %vm511_vm4 = vcmask 883712  }
  0x17   : > { %s2051_s6 = sshll.u32 %s219_s30, 5  ;;  %v2583_v17 = vld [vmem:[%s3861_s2 + $0x78] sm:$0xff]  ;;  %v2588_v18 = vld [vmem:[%s3861_s2 + $0x70] sm:$0xff]  ;;  %v2596_v19 = vld [vmem:[%s3861_s2 + $0x68] sm:$0xff]  ;;  %s2398_s23 = smov 16   ;;  %vm525_vm5 = vcmask 719872  }
  0x18   : > { %s2499_s9 = scalar_lea.vmem %s3859_s0, %s2051_s6  ;;  %533 = vmatpush1.msra.mxu1 %v2583_v17  ;;  %v2605_v20 = vld [vmem:[%s3861_s2 + $0x60] sm:$0xff]  ;;  %v2614_v21 = vld [vmem:[%s3861_s2 + $0x58] sm:$0xff]  ;;  %v2623_v22 = vld [vmem:[%s3861_s2 + $0x50] sm:$0xff]  ;;  %s2399_s26 = smov 52   ;;  %vm938_vm6 = vcmask 457728   ;;  %vm923_vm7 = vcmask 162816  }
  0x19   : > { %v2502_v1 = vld [vmem:[%s2499_s9 + $0x10] sm:$0xff]  ;;  %v2505_v2 = vld [vmem:[%s2499_s9 + $0x18] sm:$0xff]  ;;  %v2508_v3 = vld [vmem:[%s2499_s9] sm:$0xff]  ;;  %534 = vmatprep.subr.mxu1 %v3865_v0  ;;  %s2400_s30 = smov 56   ;;  %s2401_s6 = smov 20   ;;  %vm953_vm8 = vcmask 752640  }
  0x1a   : > { %356 = vmatprep.subr.mxu0 %v2505_v2  ;;  %v2512_v4 = vld [vmem:[%s2499_s9 + $0x8] sm:$0xff]  ;;  %535 = vmatpush1.msra.mxu1 %v2588_v18  ;;  %v2641_v24 = vld [vmem:[%s3861_s2 + $0x40] sm:$0xff]  ;;  %v2650_v25 = vld [vmem:[%s3861_s2 + $0x38] sm:$0xff]  ;;  %s2404_s11 = smov 32   ;;  %s2405_s12 = smov 64   ;;  %vm1129_vm9 = vcmask 261120  }
  0x1b   : > { %357 = vmatpush1.msra.mxu0 %v2502_v1  ;;  %536 = vmatprep.subr.mxu1 %v3865_v0  ;;  %v2632_v23 = vld [vmem:[%s3861_s2 + $0x48] sm:$0xff]  ;;  %v2664_v26 = vld [vmem:[%s3861_s2 + $0x30] sm:$0xff]  ;;  %v2677_v28 = vld [vmem:[%s3861_s2 + $0x20] sm:$0xff]  ;;  %s2406_s13 = smov 96   ;;  %vm1135_vm10 = vcmask 785408   ;;  %vm1132_vm11 = vcmask 523264  }
  0x1c   : > { %358 = vmatprep.subr.mxu0 %v2512_v4  ;;  %537 = vmatpush1.msra.mxu1 %v2596_v19  ;;  %v2669_v27 = vld [vmem:[%s3861_s2 + $0x28] sm:$0xff]  ;;  %v2686_v29 = vld [vmem:[%s3861_s2 + $0x18] sm:$0xff]  ;;  %v2697_v31 = vld [vmem:[%s3861_s2 + $0x10] sm:$0xff]  ;;  %s2407_s8 = smov 28   ;;  %s2409_s14 = smov 48   ;;  %vm1861_vm12 = vcmask 392192  }
  0x1d   : > { %359 = vmatpush1.msra.mxu0 %v2508_v3  ;;  %538 = vmatprep.subr.mxu1 %v3865_v0  ;;  %v2708_v33 = vld [vmem:[%s3861_s2 + $0x8] sm:$0xff]  ;;  %v2727_v37 = vld [vmem:[%s3861_s2] sm:$0xff]  ;;  %v2732_v38 = vld [vmem:[%s3861_s2 + $0xd0] sm:$0xff]  ;;  %s2052_s16 = sshll.u32 %s2465_s22, 8 }
  0x1e   : > { %1997 = vmatmul.mubr.msk.f32.vlgmr.msra.gmra.mxu0 %vm291_vm0, %v2518_v5  ;;  %677 = vmatprep.subr.mxu0 %v3865_v0  ;;  %v2749_v41 = vld [vmem:[%s3861_s2 + $0xc8] sm:$0xff]  ;;  %v2756_v42 = vld [vmem:[%s3861_s2 + $0xc0] sm:$0xff]  ;;  %v2766_v44 = vld [vmem:[%s3861_s2 + $0xb8] sm:$0xff] }
  0x1f   : > { %398 = vmatprep.mubr.f32.mxu0 %v3865_v0  ;;  %678 = vmatpush1.msra.mxu0 %v2583_v17  ;;  %v2782_v47 = vld [vmem:[%s3861_s2 + $0xb0] sm:$0xff]  ;;  %v2788_v48 = vld [vmem:[%s3861_s2 + $0xa8] sm:$0xff]  ;;  %v2809_v52 = vld [vmem:[%s3861_s2 + $0xa0] sm:$0xff] }
  0x20   : > { %679 = vmatprep.subr.mxu0 %v3865_v0  ;;  %539 = vmatpush1.msra.mxu1 %v2605_v20  ;;  %v2815_v53 = vld [vmem:[%s3861_s2 + $0x98] sm:$0xff]  ;;  %v2834_v57 = vld [vmem:[%s3861_s2 + $0x90] sm:$0xff]  ;;  %v2839_v58 = vld [vmem:[%s3861_s2 + $0x88] sm:$0xff] }
  0x21   : > { %680 = vmatpush1.msra.mxu0 %v2588_v18  ;;  %540 = vmatprep.subr.mxu1 %v3865_v0  ;;  %v2857_v61 = vld [vmem:[%s3861_s2 + $0x80] sm:$0xff] }
  0x22   : > { %1998 = vmatmul.mubr.msk.f32.gmra.mxu0 %vm291_vm0, %v228_v6  ;;  %681 = vmatprep.subr.mxu0 %v3865_v0 }
  0x23   : > { %404 = vmatprep.mubr.f32.mxu0 %v3865_v0  ;;  %682 = vmatpush1.msra.mxu0 %v2596_v19 }
  0x24   : > { %683 = vmatprep.subr.mxu0 %v3865_v0  ;;  %541 = vmatpush1.msra.mxu1 %v2614_v21 }
  0x25   : > { %684 = vmatpush1.msra.mxu0 %v2605_v20  ;;  %542 = vmatprep.subr.mxu1 %v3865_v0 }
  0x26   : > { %1999 = vmatmul.mubr.msk.f32.gmra.mxu0 %vm291_vm0, %v229_v7  ;;  %685 = vmatprep.subr.mxu0 %v3865_v0 }
  0x27   : > { %410 = vmatprep.mubr.f32.mxu0 %v3865_v0  ;;  %686 = vmatpush1.msra.mxu0 %v2614_v21 }
  0x28   : > { %687 = vmatprep.subr.mxu0 %v3865_v0  ;;  %543 = vmatpush1.msra.mxu1 %v2623_v22 }
  0x29   : > { %688 = vmatpush1.msra.mxu0 %v2623_v22  ;;  %544 = vmatprep.subr.mxu1 %v3865_v0 }
  0x2a   : > { %2000 = vmatmul.mubr.msk.f32.gmra.mxu0 %vm291_vm0, %v230_v8  ;;  %689 = vmatprep.subr.mxu0 %v3865_v0 }
  0x2b   : > { %416 = vmatprep.mubr.f32.mxu0 %v3865_v0  ;;  %545 = vmatpush1.msra.mxu1 %v2632_v23 }
  0x2c   : > { %690 = vmatpush1.msra.mxu0 %v2632_v23  ;;  %546 = vmatprep.subr.mxu1 %v3865_v0 }
  0x2d   : > { %691 = vmatprep.subr.mxu0 %v3865_v0  ;;  %547 = vmatpush1.msra.mxu1 %v2641_v24 }
  0x2e   : > { %2001 = vmatmul.mubr.msk.f32.gmra.mxu0 %vm291_vm0, %v231_v9  ;;  %548 = vmatprep.subr.mxu1 %v3865_v0 }
  0x2f   : > { %422 = vmatprep.mubr.f32.mxu0 %v3865_v0  ;;  %692 = vmatpush1.msra.mxu0 %v2641_v24 }
  0x30   : > { %693 = vmatprep.subr.mxu0 %v3865_v0  ;;  %549 = vmatpush1.msra.mxu1 %v2650_v25 }
  0x31   : > { %694 = vmatpush1.msra.mxu0 %v2650_v25  ;;  %550 = vmatprep.subr.mxu1 %v3865_v0 }
  0x32   : > { %2002 = vmatmul.mubr.msk.f32.gmra.mxu0 %vm291_vm0, %v232_v10  ;;  %695 = vmatprep.subr.mxu0 %v3865_v0 }
  0x33   : > { %428 = vmatprep.mubr.f32.mxu0 %v3865_v0  ;;  %551 = vmatpush1.msra.mxu1 %v2664_v26 }
  0x34   : > { %696 = vmatpush1.msra.mxu0 %v2664_v26  ;;  %552 = vmatprep.subr.mxu1 %v3865_v0 }
  0x35   : > { %697 = vmatprep.subr.mxu0 %v3865_v0  ;;  %553 = vmatpush1.msra.mxu1 %v2669_v27 }
  0x36   : > { %2003 = vmatmul.mubr.msk.f32.gmra.mxu0 %vm291_vm0, %v233_v11  ;;  %554 = vmatprep.subr.mxu1 %v3865_v0 }
  0x37   : > { %434 = vmatprep.mubr.f32.mxu0 %v3865_v0  ;;  %698 = vmatpush1.msra.mxu0 %v2669_v27 }
  0x38   : > { %699 = vmatprep.subr.mxu0 %v3865_v0  ;;  %555 = vmatpush1.msra.mxu1 %v2677_v28 }
  0x39   : > { %700 = vmatpush1.msra.mxu0 %v2677_v28  ;;  %556 = vmatprep.subr.mxu1 %v3865_v0 }
  0x3a   : > { %2004 = vmatmul.mubr.msk.f32.gmra.mxu0 %vm291_vm0, %v234_v12  ;;  %701 = vmatprep.subr.mxu0 %v3865_v0 }
  0x3b   : > { %440 = vmatprep.mubr.f32.mxu0 %v3865_v0  ;;  %557 = vmatpush1.msra.mxu1 %v2686_v29 }
  0x3c   : > { %702 = vmatpush1.msra.mxu0 %v2686_v29  ;;  %558 = vmatprep.subr.mxu1 %v3865_v0 }
  0x3d   : > { %703 = vmatprep.subr.mxu0 %v3865_v0  ;;  %559 = vmatpush1.msra.mxu1 %v2697_v31 }
  0x3e   : > { %2005 = vmatmul.mubr.msk.f32.gmra.mxu0 %vm291_vm0, %v235_v13  ;;  %560 = vmatprep.subr.mxu1 %v3865_v0 }
  0x3f   : > { %446 = vmatprep.mubr.f32.mxu0 %v3865_v0  ;;  %704 = vmatpush1.msra.mxu0 %v2697_v31 }
  0x40   : > { %705 = vmatprep.subr.mxu0 %v3865_v0  ;;  %561 = vmatpush1.msra.mxu1 %v2708_v33 }
  0x41   : > { %706 = vmatpush1.msra.mxu0 %v2708_v33  ;;  %562 = vmatprep.subr.mxu1 %v3865_v0 }
  0x42   : > { %2006 = vmatmul.mubr.msk.f32.gmra.mxu0 %vm291_vm0, %v236_v14  ;;  %707 = vmatprep.subr.mxu0 %v3865_v0 }
  0x43   : > { %452 = vmatprep.mubr.f32.mxu0 %v3865_v0  ;;  %563 = vmatpush1.msra.mxu1 %v2727_v37 }
  0x44   : > { %574 = vmatprep.subr.mxu1 %v3865_v0  ;;  %708 = vmatpush1.msra.mxu0 %v2727_v37 }
  0x45   : > { %575 = vmatpush2.msra.mxu1 %v2732_v38  ;;  %719 = vmatprep.subr.mxu0 %v3865_v0 }
  0x46   : > { %2007 = vmatmul.mubr.msk.f32.gmra.mxu0 %vm291_vm0, %v237_v15  ;;  %576 = vmatprep.subr.mxu1 %v3865_v0 }
  0x47   : > { %458 = vmatprep.mubr.f32.mxu0 %v3865_v0  ;;  %720 = vmatpush2.msra.mxu0 %v2732_v38 }
  0x48   : > { %577 = vmatpush2.msra.mxu1 %v2749_v41  ;;  %721 = vmatprep.subr.mxu0 %v3865_v0 }
  0x49   : > { %578 = vmatprep.subr.mxu1 %v3865_v0  ;;  %722 = vmatpush2.msra.mxu0 %v2749_v41 }
  0x4a   : > { %2008 = vmatmul.mubr.msk.f32.gmra.mxu0 %vm291_vm0, %v238_v16  ;;  %579 = vmatpush2.msra.mxu1 %v2756_v42 }
  0x4b   : > { %723 = vmatprep.subr.mxu0 %v3865_v0  ;;  %580 = vmatprep.subr.mxu1 %v3865_v0 }
  0x4c   : > { %724 = vmatpush2.msra.mxu0 %v2756_v42  ;;  %581 = vmatpush2.msra.mxu1 %v2766_v44 }
  0x4d   : > { %725 = vmatprep.subr.mxu0 %v3865_v0  ;;  %582 = vmatprep.subr.mxu1 %v3865_v0 }
  0x4e   : > { %726 = vmatpush2.msra.mxu0 %v2766_v44  ;;  %583 = vmatpush2.msra.mxu1 %v2782_v47 }
  0x4f   : > { %727 = vmatprep.subr.mxu0 %v3865_v0  ;;  %584 = vmatprep.subr.mxu1 %v3865_v0 }
  0x50   : > { %728 = vmatpush2.msra.mxu0 %v2782_v47  ;;  %585 = vmatpush2.msra.mxu1 %v2788_v48 }
  0x51   : > { %586 = vmatprep.subr.mxu1 %v3865_v0  ;;  %729 = vmatprep.subr.mxu0 %v3865_v0 }
  0x52   : > { %587 = vmatpush2.msra.mxu1 %v2809_v52  ;;  %730 = vmatpush2.msra.mxu0 %v2788_v48 }
  0x53   : > { %588 = vmatprep.subr.mxu1 %v3865_v0  ;;  %731 = vmatprep.subr.mxu0 %v3865_v0 }
  0x54   : > { %589 = vmatpush2.msra.mxu1 %v2815_v53  ;;  %732 = vmatpush2.msra.mxu0 %v2809_v52 }
  0x55   : > { %590 = vmatprep.subr.mxu1 %v3865_v0  ;;  %733 = vmatprep.subr.mxu0 %v3865_v0 }
  0x56   : > { %591 = vmatpush2.msra.mxu1 %v2834_v57  ;;  %734 = vmatpush2.msra.mxu0 %v2815_v53 }
  0x57   : > { %592 = vmatprep.subr.mxu1 %v3865_v0  ;;  %735 = vmatprep.subr.mxu0 %v3865_v0 }
  0x58   : > { %593 = vmatpush2.msra.mxu1 %v2839_v58  ;;  %736 = vmatpush2.msra.mxu0 %v2834_v57 }
  0x59   : > { %594 = vmatprep.subr.mxu1 %v3865_v0  ;;  %737 = vmatprep.subr.mxu0 %v3865_v0 }
  0x5a   : > { %595 = vmatpush2.msra.mxu1 %v2857_v61  ;;  %738 = vmatpush2.msra.mxu0 %v2839_v58 }
  0x5b   : > { %818 = vmatprep.subr.mxu1 %v3865_v0  ;;  %739 = vmatprep.subr.mxu0 %v3865_v0 }
  0x5c   : > { %740 = vmatpush2.msra.mxu0 %v2857_v61 }
  0x5d   : > { %1002 = vmatprep.subr.mxu0 %v3865_v0 }
  0xde   : > { %v2691_v30 = vpop.f32.mrf.mxu0 }
  0xe0   : > { %v2702_v32 = vpop.f32.mrf.mxu0 }
  0xe1   : > { %v2178_v13 = vpack.i.bf16 %v2702_v32, %v2691_v30 }
  0xe2   : > { %v2713_v34 = vpop.f32.mrf.mxu0 }
  0xe3   : > { %v2148_v35 = vpack.i.bf16 %v2713_v34, %v2691_v30 }
  0xe4   : > { %v2721_v36 = vpop.f32.mrf.mxu0 }
  0xe5   : > { %2149 = vrot.lane.b32.xlu1 %v2148_v35, %s2394_s7  ;;  %v2193_v15 = vpack.i.bf16 %v2721_v36, %v2713_v34 }
  0xe6   : > { %v2737_v39 = vpop.f32.mrf.mxu0 }
  0xe7   : > { %v2168_v11 = vpack.i.bf16 %v2737_v39, %v2691_v30 }
  0xe8   : > { %v2743_v40 = vpop.f32.mrf.mxu0 }
  0xe9   : > { %v2183_v12 = vpack.i.bf16 %v2713_v34, %v2743_v40 }
  0xea   : > { %v2759_v43 = vpop.f32.mrf.mxu0 }
  0xec   : > { %v2770_v45 = vpop.f32.mrf.mxu0 }
  0xed   : > { %v2198_v16 = vpack.i.bf16 %v2770_v45, %v2759_v43 }
  0xee   : > { %v2776_v46 = vpop.f32.mrf.mxu0 }
  0xef   : > { %v2792_v49 = vpack.i.bf16 %v2776_v46, %v2737_v39 }
  0xf0   : > { %v2796_v50 = vpop.f32.mrf.mxu0 }
  0xf1   : > { %2154 = vrot.lane.b32.xlu0 %v2792_v49, %s2395_s25  ;;  %v2188_v14 = vpack.i.bf16 %v2759_v43, %v2796_v50 }
  0xf2   : > { %v2803_v51 = vpop.f32.mrf.mxu0 }
  0xf3   : > { %v2158_v54 = vpack.i.bf16 %v2803_v51, %v2776_v46  ;;  %v2163_v9 = vpack.i.bf16 %v2803_v51, %v2759_v43 }
  0xf4   : > { %v2821_v55 = vpop.f32.mrf.mxu0 }
  0xf5   : > { %2159 = vrot.lane.b32.xlu1 %v2158_v54, %s2396_s10  ;;  %v2203_v36 = vpack.i.bf16 %v2821_v55, %v2803_v51 }
  0xf6   : > { %v2827_v56 = vpop.f32.mrf.mxu0 }
  0xf7   : > { %483 = vrot.lane.b32.xlu0 %v2827_v56, %s2397_s15 }
  0xf8   : > { %v2844_v59 = vpop.f32.mrf.mxu0 }
  0xfa   : > { %v2850_v60 = vpop.f32.mrf.mxu0 }
  0xfb   : > { %643 = vrot.lane.b32.xlu0 %v2827_v56, %s2396_s10 }
  0xfc   : > { %v2862_v62 = vpop.f32.mrf.mxu0 }
  0xfe   : > { %v442_v63 = vpop.f32.mrf.mxu0 }
  0xff   : > { %491 = vrot.lane.b32.xlu1 %v442_v63, %s2398_s23 }
 0x100   : > { %v444_v6 = vpop.f32.mrf.mxu0 }
 0x102   : > { %v448_v7 = vpop.f32.mrf.mxu0 }
 0x103   : > { %649 = vrot.lane.b32.xlu1 %v442_v63, %s2397_s15 }
 0x104   : > { %v450_v8 = vpop.f32.mrf.mxu0 }
 0x106   : > { %v454_v10 = vpop.f32.mrf.mxu0 }
 0x107   : > { %2164 = vrot.lane.b32.xlu1 %v2163_v9, %s2395_s25  ;;  %499 = vrot.lane.b32.xlu0 %v454_v10, %s2399_s26 }
 0x108   : > { %v456_v32 = vpop.f32.mrf.mxu0 }
 0x10a   : > { %v460_v35 = vpop.f32.mrf.mxu0 }
 0x10b   : > { %493 = vrot.lane.b32.xlu1 %v448_v7, %s2398_s23  ;;  %655 = vrot.lane.b32.xlu0 %v454_v10, %s2398_s23 }
 0x10c   : > { %v462_v40 = vpop.f32.mrf.mxu0 }
 0x10f   : > { %645 = vrot.lane.b32.xlu1 %v2850_v60, %s2396_s10  ;;  %485 = vrot.lane.b32.xlu0 %v2850_v60, %s2397_s15 }
 0x113   : > { %2174 = vrot.lane.b32.xlu1 %v2792_v49, %s2394_s7  ;;  %651 = vrot.lane.b32.xlu0 %v448_v7, %s2397_s15 }
 0x117   : > { %790 = vrot.lane.b32.xlu1 %v442_v63, %s2396_s10  ;;  %2169 = vrot.lane.b32.xlu0 %v2168_v11, %s2400_s30 }
 0x11b   : > { %2184 = vrot.lane.b32.xlu1 %v2183_v12, %s2400_s30  ;;  %784 = vrot.lane.b32.xlu0 %v2827_v56, %s2395_s25 }
 0x11f   : > { %962 = vrot.lane.b32.xlu1 %v444_v6, %s2395_s25  ;;  %2179 = vrot.lane.b32.xlu0 %v2178_v13, %s2401_s6 }
 0x123   : > { %2189 = vrot.lane.b32.xlu1 %v2188_v14, %s2394_s7  ;;  %960 = vrot.lane.b32.xlu0 %v442_v63, %s2395_s25 }
 0x127   : > { %792 = vrot.lane.b32.xlu1 %v448_v7, %s2396_s10  ;;  %786 = vrot.lane.b32.xlu0 %v2850_v60, %s2395_s25 }
 0x12b   : > { %2199 = vrot.lane.b32.xlu1 %v2198_v16, %s2400_s30  ;;  %2194 = vrot.lane.b32.xlu0 %v2193_v15, %s2401_s6  ;;  %s2411_s6 = smov [#allocation2]  }
 0x12f   : > { %966 = vrot.lane.b32.xlu1 %v450_v8, %s2395_s25  ;;  %964 = vrot.lane.b32.xlu0 %v448_v7, %s2395_s25  ;;  %s2402_s25 = smov 88  }
 0x133   : > { %796 = vrot.lane.b32.xlu0 %v454_v10, %s2397_s15  ;;  %976 = vrot.lane.b32.xlu1 %v456_v32, %s2396_s10 }
 0x137   : > { %974 = vrot.lane.b32.xlu0 %v454_v10, %s2396_s10  ;;  %657 = vrot.lane.b32.xlu1 %v460_v35, %s2398_s23 }
 0x13b   : > { %2204 = vrot.lane.b32.xlu1 %v2203_v36, %s2394_s7  ;;  %501 = vrot.lane.b32.xlu0 %v460_v35, %s2399_s26  ;;  %s2403_s7 = smov 124  }
 0x13f   : > { %798 = vrot.lane.b32.xlu0 %v460_v35, %s2397_s15  ;;  %980 = vrot.lane.b32.xlu1 %v462_v40, %s2396_s10 }
 0x143   : > { %978 = vrot.lane.b32.xlu0 %v460_v35, %s2396_s10  ;;  %907 = vrot.lane.b32.xlu1 %v2502_v1, %s2399_s26  ;;  %s2408_s10 = smov 84  }
 0x147   : > { %1097 = vrot.lane.b32.xlu1 %v2505_v2, %s2398_s23  ;;  %766 = vrot.lane.b32.xlu0 %v2502_v1, %s2402_s25 }
 0x14b   : > { %905 = vrot.lane.b32.xlu1 %v2508_v3, %s2399_s26  ;;  %1095 = vrot.lane.b32.xlu0 %v2502_v1, %s2398_s23  ;;  %s3815_s26 = scalar_lea.hbm %s3864_s5, %s2052_s16 }
 0x14f   : > { %1093 = vrot.lane.b32.xlu1 %v2512_v4, %s2398_s23  ;;  %764 = vrot.lane.b32.xlu0 %v2508_v3, %s2402_s25  ;;  %s2335_s25 = sshll.u32 %s2411_s6, 4  ;;  %s2336_s25 = int_to_ptr.vmem [resolvable:$false] %s2335_s25 }
 0x153   : > { %621 = vrot.lane.b32.xlu1 %v2508_v3, %s2403_s7  ;;  %1091 = vrot.lane.b32.xlu0 %v2508_v3, %s2398_s23 }
 0x157   : > { %623 = vrot.lane.b32.xlu0 %v2502_v1, %s2403_s7  ;;  %v2936_v2 = vpop.permute.xlu1 %2149  ;;  %s2337_s7 = scalar_lea.vmem %s2336_s25, 512 }
 0x158   : > { %v2151_v7 = vunpack.i.l.bf16 %v2936_v2 }
 0x163   : > { %v2155_v45 = vpop.permute.xlu0 %2154 }
 0x164   : > { %v2156_v55 = vunpack.i.l.bf16 %v2155_v45  ;;  %v2157_v11 = vunpack.i.h.bf16 %v2155_v45 }
 0x166   : > { %v506_v3 = vsel %vm505_vm1, %v2691_v30, %v2156_v55  ;;  %v661_v30 = vsel %vm505_vm1, %v2151_v7, %v2737_v39 }
 0x167   : > { %v2938_v49 = vpop.permute.xlu1 %2159  ;;  %v663_v32 = vsel %vm508_vm2, %v661_v30, %v2157_v11 }
 0x168   : > { %v2161_v4 = vunpack.i.l.bf16 %v2938_v49 }
 0x169   : > { %v484_v50 = vpop.permute.xlu0 %483 }
 0x16a   : > { %v509_v1 = vsel %vm508_vm2, %v506_v3, %v2161_v4 }
 0x16b   : > { %v512_v13 = vsel %vm511_vm4, %v509_v1, %v484_v50 }
 0x16d   : > { %v644_v63 = vpop.permute.xlu0 %643 }
 0x16e   : > { %v665_v36 = vsel %vm511_vm4, %v663_v32, %v644_v63 }
 0x171   : > { %v492_v54 = vpop.permute.xlu1 %491 }
 0x172   : > { %v514_v8 = vsel %vm291_vm0, %v484_v50, %v492_v54 }
 0x175   : > { %v650_v6 = vpop.permute.xlu1 %649 }
 0x176   : > { %v667_v14 = vsel %vm291_vm0, %v644_v63, %v650_v6 }
 0x179   : > { %v2946_v9 = vpop.permute.xlu1 %2164  ;;  %v500_v10 = vpop.permute.xlu0 %499 }
 0x17a   : > { %v517_v12 = vsel %vm516_vm3, %v514_v8, %v500_v10  ;;  %v2167_v54 = vunpack.i.h.bf16 %v2946_v9 }
 0x17b   : > { %2010 = vmatprep.mubr.msk.f32.mxu1 %vm525_vm5, %v517_v12 }
 0x17c   : > { %597 = vmatmul.mubr.f32.vlgmr.msra.gmra.mxu1 %v512_v13 }
 0x17d   : > { %v2954_v15 = vpop.permute.xlu1 %493  ;;  %v656_v16 = vpop.permute.xlu0 %655  ;;  %819 = vmatpush1.msra.mxu1 %v2583_v17 }
 0x17e   : > { %v669_v35 = vsel %vm516_vm3, %v667_v14, %v656_v16  ;;  %820 = vmatprep.subr.mxu1 %v3865_v0 }
 0x17f   : > { %2014 = vmatprep.mubr.msk.f32.mxu0 %vm525_vm5, %v669_v35  ;;  %821 = vmatpush1.msra.mxu1 %v2588_v18 }
 0x180   : > { %742 = vmatmul.mubr.f32.vlgmr.msra.gmra.mxu0 %v665_v36  ;;  %822 = vmatprep.subr.mxu1 %v3865_v0 }
 0x181   : > { %1003 = vmatpush1.msra.mxu0 %v2583_v17  ;;  %v2965_v39 = vpop.permute.xlu1 %645  ;;  %v2967_v40 = vpop.permute.xlu0 %485  ;;  %823 = vmatpush1.msra.mxu1 %v2596_v19 }
 0x182   : > { %1004 = vmatprep.subr.mxu0 %v3865_v0  ;;  %824 = vmatprep.subr.mxu1 %v3865_v0 }
 0x183   : > { %1005 = vmatpush1.msra.mxu0 %v2588_v18  ;;  %825 = vmatpush1.msra.mxu1 %v2605_v20 }
 0x184   : > { %1006 = vmatprep.subr.mxu0 %v3865_v0  ;;  %826 = vmatprep.subr.mxu1 %v3865_v0 }
 0x185   : > { %1007 = vmatpush1.msra.mxu0 %v2596_v19  ;;  %v2977_v17 = vpop.permute.xlu1 %2174  ;;  %v2979_v45 = vpop.permute.xlu0 %651  ;;  %827 = vmatpush1.msra.mxu1 %v2614_v21 }
 0x186   : > { %1008 = vmatprep.subr.mxu0 %v3865_v0  ;;  %828 = vmatprep.subr.mxu1 %v3865_v0 }
 0x187   : > { %1009 = vmatpush1.msra.mxu0 %v2605_v20  ;;  %829 = vmatpush1.msra.mxu1 %v2623_v22 }
 0x188   : > { %1010 = vmatprep.subr.mxu0 %v3865_v0  ;;  %830 = vmatprep.subr.mxu1 %v3865_v0 }
 0x189   : > { %1011 = vmatpush1.msra.mxu0 %v2614_v21  ;;  %v2989_v18 = vpop.permute.xlu1 %790  ;;  %v2991_v19 = vpop.permute.xlu0 %2169  ;;  %831 = vmatpush1.msra.mxu1 %v2632_v23 }
 0x18a   : > { %1012 = vmatprep.subr.mxu0 %v3865_v0  ;;  %832 = vmatprep.subr.mxu1 %v3865_v0 }
 0x18b   : > { %1013 = vmatpush1.msra.mxu0 %v2623_v22  ;;  %833 = vmatpush1.msra.mxu1 %v2641_v24 }
 0x18c   : > { %1014 = vmatprep.subr.mxu0 %v3865_v0  ;;  %834 = vmatprep.subr.mxu1 %v3865_v0 }
 0x18d   : > { %1015 = vmatpush1.msra.mxu0 %v2632_v23  ;;  %v3001_v20 = vpop.permute.xlu1 %2184  ;;  %v3003_v21 = vpop.permute.xlu0 %784  ;;  %835 = vmatpush1.msra.mxu1 %v2650_v25 }
 0x18e   : > { %1016 = vmatprep.subr.mxu0 %v3865_v0  ;;  %836 = vmatprep.subr.mxu1 %v3865_v0 }
 0x18f   : > { %1017 = vmatpush1.msra.mxu0 %v2641_v24  ;;  %837 = vmatpush1.msra.mxu1 %v2664_v26 }
 0x190   : > { %1018 = vmatprep.subr.mxu0 %v3865_v0  ;;  %838 = vmatprep.subr.mxu1 %v3865_v0 }
 0x191   : > { %1019 = vmatpush1.msra.mxu0 %v2650_v25  ;;  %v3013_v22 = vpop.permute.xlu1 %962  ;;  %v3015_v23 = vpop.permute.xlu0 %2179  ;;  %839 = vmatpush1.msra.mxu1 %v2669_v27 }
 0x192   : > { %1020 = vmatprep.subr.mxu0 %v3865_v0  ;;  %840 = vmatprep.subr.mxu1 %v3865_v0  ;;  %v2182_v14 = vunpack.i.h.bf16 %v3015_v23  ;;  %v2181_v16 = vunpack.i.l.bf16 %v3015_v23 }
 0x193   : > { %1021 = vmatpush1.msra.mxu0 %v2664_v26  ;;  %841 = vmatpush1.msra.mxu1 %v2677_v28 }
 0x194   : > { %1022 = vmatprep.subr.mxu0 %v3865_v0  ;;  %842 = vmatprep.subr.mxu1 %v3865_v0 }
 0x195   : > { %1023 = vmatpush1.msra.mxu0 %v2669_v27  ;;  %v3025_v24 = vpop.permute.xlu1 %2189  ;;  %v961_v25 = vpop.permute.xlu0 %960  ;;  %843 = vmatpush1.msra.mxu1 %v2686_v29 }
 0x196   : > { %1024 = vmatprep.subr.mxu0 %v3865_v0  ;;  %844 = vmatprep.subr.mxu1 %v3865_v0  ;;  %v968_v4 = vsel %vm505_vm1, %v961_v25, %v3013_v22  ;;  %v2191_v32 = vunpack.i.l.bf16 %v3025_v24  ;;  %v2192_v22 = vunpack.i.h.bf16 %v3025_v24  ;;  %v2187_v24 = vunpack.i.h.bf16 %v3001_v20 }
 0x197   : > { %1025 = vmatpush1.msra.mxu0 %v2677_v28  ;;  %845 = vmatpush1.msra.mxu1 %v2697_v31  ;;  %v992_v10 = vsel %vm291_vm0, %v2844_v59, %v968_v4 }
 0x198   : > { %1026 = vmatprep.subr.mxu0 %v3865_v0  ;;  %846 = vmatprep.subr.mxu1 %v3865_v0 }
 0x199   : > { %1027 = vmatpush1.msra.mxu0 %v2686_v29  ;;  %v3035_v26 = vpop.permute.xlu1 %792  ;;  %v3037_v27 = vpop.permute.xlu0 %786  ;;  %847 = vmatpush1.msra.mxu1 %v2708_v33 }
 0x19a   : > { %1028 = vmatprep.subr.mxu0 %v3865_v0  ;;  %848 = vmatprep.subr.mxu1 %v3865_v0 }
 0x19b   : > { %1029 = vmatpush1.msra.mxu0 %v2697_v31  ;;  %849 = vmatpush1.msra.mxu1 %v2727_v37  ;;  %v2166_v31 = vunpack.i.l.bf16 %v2946_v9  ;;  %v2176_v9 = vunpack.i.l.bf16 %v2977_v17 }
 0x19c   : > { %1030 = vmatprep.subr.mxu0 %v3865_v0  ;;  %860 = vmatprep.subr.mxu1 %v3865_v0 }
 0x19d   : > { %1031 = vmatpush1.msra.mxu0 %v2708_v33  ;;  %v3047_v28 = vpop.permute.xlu1 %2199  ;;  %v3049_v29 = vpop.permute.xlu0 %2194  ;;  %861 = vmatpush2.msra.mxu1 %v2732_v38 }
 0x19e   : > { %1032 = vmatprep.subr.mxu0 %v3865_v0  ;;  %862 = vmatprep.subr.mxu1 %v3865_v0  ;;  %v2201_v3 = vunpack.i.l.bf16 %v3047_v28  ;;  %v2196_v1 = vunpack.i.l.bf16 %v3049_v29 }
 0x19f   : > { %1033 = vmatpush1.msra.mxu0 %v2727_v37  ;;  %863 = vmatpush2.msra.mxu1 %v2749_v41  ;;  %v2152_v37 = vunpack.i.h.bf16 %v2936_v2  ;;  %v507_v2 = vsel %vm505_vm1, %v2713_v34, %v2166_v31  ;;  %v668_v34 = vsel %vm291_vm0, %v2965_v39, %v2979_v45  ;;  %v808_v31 = vsel %vm291_vm0, %v3003_v21, %v2989_v18 }
 0x1a0   : > { %1044 = vmatprep.subr.mxu0 %v3865_v0  ;;  %864 = vmatprep.subr.mxu1 %v3865_v0 }
 0x1a1   : > { %1045 = vmatpush2.msra.mxu0 %v2732_v38  ;;  %v3060_v33 = vpop.permute.xlu1 %966  ;;  %v3062_v50 = vpop.permute.xlu0 %964  ;;  %865 = vmatpush2.msra.mxu1 %v2756_v42 }
 0x1a2   : > { %1046 = vmatprep.subr.mxu0 %v3865_v0  ;;  %866 = vmatprep.subr.mxu1 %v3865_v0  ;;  %v969_v4 = vsel %vm505_vm1, %v3062_v50, %v3060_v33 }
 0x1a3   : > { %1047 = vmatpush2.msra.mxu0 %v2749_v41  ;;  %867 = vmatpush2.msra.mxu1 %v2766_v44  ;;  %v2162_v41 = vunpack.i.h.bf16 %v2938_v49  ;;  %v2171_v49 = vunpack.i.l.bf16 %v2991_v19 }
 0x1a4   : > { %1048 = vmatprep.subr.mxu0 %v3865_v0  ;;  %868 = vmatprep.subr.mxu1 %v3865_v0 }
 0x1a5   : > { %1049 = vmatpush2.msra.mxu0 %v2756_v42  ;;  %v3074_v38 = vpop.permute.xlu0 %796  ;;  %v977_v55 = vpop.permute.xlu1 %976  ;;  %869 = vmatpush2.msra.mxu1 %v2782_v47  ;;  %v662_v42 = vsel %vm505_vm1, %v2152_v37, %v2759_v43  ;;  %v510_v6 = vsel %vm508_vm2, %v507_v2, %v2162_v41  ;;  %v2197_v43 = vunpack.i.h.bf16 %v3049_v29  ;;  %v802_v30 = vsel %vm505_vm1, %v2171_v49, %v2176_v9 }
 0x1a6   : > { %1050 = vmatprep.subr.mxu0 %v3865_v0  ;;  %870 = vmatprep.subr.mxu1 %v3865_v0  ;;  %v664_v63 = vsel %vm508_vm2, %v662_v42, %v2167_v54  ;;  %v2172_v29 = vunpack.i.h.bf16 %v2991_v19  ;;  %v924_v37 = vsel %vm923_vm7, %v2181_v16, %v2182_v14  ;;  %v810_v54 = vsel %vm516_vm3, %v808_v31, %v3074_v38 }
 0x1a7   : > { %1051 = vmatpush2.msra.mxu0 %v2766_v44  ;;  %871 = vmatpush2.msra.mxu1 %v2788_v48  ;;  %v2202_v44 = vunpack.i.h.bf16 %v3047_v28  ;;  %v666_v59 = vsel %vm511_vm4, %v664_v63, %v2965_v39  ;;  %v925_v36 = vsel %vm923_vm7, %v2196_v1, %v2197_v43  ;;  %v2177_v28 = vunpack.i.h.bf16 %v2977_v17 }
 0x1a8   : > { %1052 = vmatprep.subr.mxu0 %v3865_v0  ;;  %872 = vmatprep.subr.mxu1 %v3865_v0 }
 0x1a9   : > { %1053 = vmatpush2.msra.mxu0 %v2782_v47  ;;  %v975_v7 = vpop.permute.xlu0 %974  ;;  %v658_v8 = vpop.permute.xlu1 %657  ;;  %873 = vmatpush2.msra.mxu1 %v2809_v52  ;;  %v515_v47 = vsel %vm291_vm0, %v2967_v40, %v2954_v15  ;;  %v513_v15 = vsel %vm511_vm4, %v510_v6, %v2967_v40  ;;  %v940_v35 = vsel %vm938_vm6, %v2201_v3, %v2202_v44 }
 0x1aa   : > { %1054 = vmatprep.subr.mxu0 %v3865_v0  ;;  %v982_v11 = vsel %vm508_vm2, %v975_v7, %v977_v55  ;;  %v670_v12 = vsel %vm516_vm3, %v668_v34, %v658_v8  ;;  %874 = vmatprep.subr.mxu1 %v3865_v0  ;;  %v954_v18 = vsel %vm953_vm8, %v2177_v28, %v2191_v32 }
 0x1ab   : > { %1055 = vmatpush2.msra.mxu0 %v2788_v48  ;;  %2015 = vmatprep.mubr.msk.f32.mxu0 %vm525_vm5, %v670_v12  ;;  %v994_v13 = vsel %vm516_vm3, %v992_v10, %v982_v11  ;;  %v2186_v48 = vunpack.i.l.bf16 %v3001_v20  ;;  %v803_v55 = vsel %vm505_vm1, %v2187_v24, %v2192_v22  ;;  %v993_v34 = vsel %vm291_vm0, %v2862_v62, %v969_v4 }
 0x1ac   : > { %1056 = vmatprep.subr.mxu0 %v3865_v0  ;;  %747 = vmatmul.mubr.f32.gmra.mxu0 %v666_v59  ;;  %v805_v50 = vsel %vm508_vm2, %v803_v55, %v2803_v51 }
 0x1ad   : > { %1057 = vmatpush2.msra.mxu0 %v2809_v52  ;;  %875 = vmatpush2.msra.mxu1 %v2815_v53  ;;  %v2205_v39 = vpop.permute.xlu1 %2204  ;;  %v502_v45 = vpop.permute.xlu0 %501  ;;  %v804_v52 = vsel %vm508_vm2, %v802_v30, %v2776_v46  ;;  %v987_v46 = vsel %vm505_vm1, %v925_v36, %v940_v35  ;;  %v939_v19 = vsel %vm938_vm6, %v2172_v29, %v2186_v48 }
 0x1ae   : > { %1058 = vmatprep.subr.mxu0 %v3865_v0  ;;  %2022 = vmatprep.mubr.msk.f32.mxu0 %vm525_vm5, %v994_v13  ;;  %v2207_v40 = vunpack.i.h.bf16 %v2205_v39  ;;  %v2206_v23 = vunpack.i.l.bf16 %v2205_v39  ;;  %v518_v25 = vsel %vm516_vm3, %v515_v47, %v502_v45  ;;  %v986_v41 = vsel %vm505_vm1, %v924_v37, %v939_v19 }
 0x1af   : > { %876 = vmatprep.subr.mxu1 %v3865_v0  ;;  %1059 = vmatpush2.msra.mxu0 %v2815_v53  ;;  %v806_v38 = vsel %vm511_vm4, %v804_v52, %v3003_v21  ;;  %v807_v51 = vsel %vm511_vm4, %v805_v50, %v3037_v27 }
 0x1b0   : > { %2011 = vmatprep.mubr.msk.f32.mxu1 %vm525_vm5, %v518_v25  ;;  %877 = vmatpush2.msra.mxu1 %v2834_v57  ;;  %v955_v17 = vsel %vm953_vm8, %v2206_v23, %v2207_v40 }
 0x1b1   : > { %1060 = vmatprep.subr.mxu0 %v3865_v0  ;;  %602 = vmatmul.mubr.f32.gmra.mxu1 %v513_v15  ;;  %v799_v53 = vpop.permute.xlu0 %798  ;;  %v989_v20 = vsel %vm508_vm2, %v987_v46, %v955_v17  ;;  %v981_v42 = vpop.permute.xlu1 %980 }
 0x1b2   : > { %878 = vmatprep.subr.mxu1 %v3865_v0  ;;  %1061 = vmatpush2.msra.mxu0 %v2834_v57  ;;  %v991_v2 = vsel %vm511_vm4, %v989_v20, %v2850_v60  ;;  %v988_v57 = vsel %vm508_vm2, %v986_v41, %v954_v18  ;;  %v809_v60 = vsel %vm291_vm0, %v3037_v27, %v3035_v26 }
 0x1b3   : > { %879 = vmatpush2.msra.mxu1 %v2839_v58  ;;  %2018 = vmatprep.mubr.msk.f32.mxu1 %vm525_vm5, %v810_v54  ;;  %v811_v49 = vsel %vm516_vm3, %v809_v60, %v799_v53 }
 0x1b4   : > { %1062 = vmatprep.subr.mxu0 %v3865_v0  ;;  %880 = vmatprep.subr.mxu1 %v3865_v0 }
 0x1b5   : > { %1063 = vmatpush2.msra.mxu0 %v2839_v58  ;;  %881 = vmatpush2.msra.mxu1 %v2857_v61  ;;  %v979_v33 = vpop.permute.xlu0 %978  ;;  %v990_v58 = vsel %vm511_vm4, %v988_v57, %v2827_v56  ;;  %v908_v18 = vpop.permute.xlu1 %907 }
 0x1b6   : > { %1064 = vmatprep.subr.mxu0 %v3865_v0  ;;  %883 = vmatmul.mubr.f32.vlgmr.msra.gmra.mxu1 %v806_v38  ;;  %v983_v21 = vsel %vm508_vm2, %v979_v33, %v981_v42 }
 0x1b7   : > { %1065 = vmatpush2.msra.mxu0 %v2857_v61  ;;  %2019 = vmatprep.mubr.msk.f32.mxu1 %vm525_vm5, %v811_v49  ;;  %v995_v26 = vsel %vm516_vm3, %v993_v34, %v983_v21  ;;  %v2009_v61 = vld [vmem:[%s3863_s4] ss:$0 sm:$0xff] }
 0x1b8   : > { %1067 = vmatmul.mubr.f32.vlgmr.msra.gmra.mxu0 %v990_v58  ;;  %1309 = vmatprep.subr.mxu0 %v3865_v0 }
 0x1b9   : > { %2023 = vmatprep.mubr.msk.f32.mxu0 %vm525_vm5, %v995_v26  ;;  %v767_v7 = vpop.permute.xlu0 %766  ;;  %v1098_v57 = vpop.permute.xlu1 %1097 }
 0x1ba   : > { %888 = vmatmul.mubr.f32.gmra.mxu1 %v807_v51 }
 0x1bb   : > { %2071 = vmatprep.mubr.msk.f32.mxu1 %vm291_vm0, %v2518_v5 }
 0x1bc   : > { %1072 = vmatmul.mubr.f32.gmra.mxu0 %v991_v2 }
 0x1bd   : > { %v3201_v5 = vpop.permute.xlu0 %1095  ;;  %v906_v60 = vpop.permute.xlu1 %905 }
 0x1be   : > { %v1100_v49 = vsel %vm291_vm0, %v3201_v5, %v1098_v57  ;;  %v3340_v57 = vld [vmem:[%s3862_s3 + $0x58] sm:$0xff] }
 0x1c1   : > { %v765_v8 = vpop.permute.xlu0 %764  ;;  %v1094_v21 = vpop.permute.xlu1 %1093 }
 0x1c5   : > { %v1092_v58 = vpop.permute.xlu0 %1091  ;;  %v622_v5 = vpop.permute.xlu1 %621 }
 0x23c   : > { %v598_v56 = vpop.f32.mrf.mxu1 }
 0x23d   : > { %v3196_v62 = vadd.f32 %v2009_v61, %v598_v56 }
 0x23e   : > { %v600_v63 = vpop.f32.mrf.mxu1 }
 0x240   : > { %v743_v6 = vpop.f32.mrf.mxu0 }
 0x241   : > { %v3198_v44 = vadd.f32 %v2009_v61, %v743_v6  ;;  %v2012_v6 = vmul.f32 -1.442695, %v3196_v62 }
 0x242   : > { %v745_v3 = vpop.f32.mrf.mxu0 }
 0x243   : > { %v2016_v27 = vmul.f32 -1.442695, %v3198_v44 }
 0x245   : > { %2268 = vpow2.f32 %v2016_v27 }
 0x252   : > { %v2269_v43 = vpop.eup %2268 }
 0x253   : > { %v758_v1 = vadd.f32 1.0, %v2269_v43 }
 0x255   : > { %2270 = vrcp.f32 %v758_v1 }
 0x262   : > { %v3203_v9 = vpop.eup %2270 }
 0x263   : > { %3877 = vst [vmem:[#allocation5_spill] sm:$0xff] %v3203_v9  ;;  %v770_v10 = vmul.f32 %v3203_v9, %v765_v8 }
 0x265   : > { %1107 = vrot.lane.b32.xlu0 %v770_v10, %s2404_s11 }
 0x26c   : > { %v748_v11 = vpop.f32.mrf.mxu0 }
 0x26d   : > { %v3207_v12 = vadd.f32 %v2009_v61, %v748_v11 }
 0x26e   : > { %v750_v47 = vpop.f32.mrf.mxu0 }
 0x26f   : > { %v2017_v59 = vmul.f32 -1.442695, %v3207_v12 }
 0x271   : > { %2272 = vpow2.f32 %v2017_v59  ;;  %v603_v13 = vpop.f32.mrf.mxu1 }
 0x272   : > { %v3210_v30 = vadd.f32 %v2009_v61, %v603_v13 }
 0x273   : > { %v605_v14 = vpop.f32.mrf.mxu1 }
 0x274   : > { %v2013_v63 = vmul.f32 -1.442695, %v3210_v30 }
 0x276   : > { %v884_v16 = vpop.f32.mrf.mxu1 }
 0x277   : > { %v3212_v15 = vadd.f32 %v2009_v61, %v884_v16 }
 0x278   : > { %v1068_v48 = vpop.f32.mrf.mxu0  ;;  %v886_v32 = vpop.f32.mrf.mxu1 }
 0x279   : > { %v2020_v35 = vmul.f32 -1.442695, %v3212_v15  ;;  %v3215_v36 = vadd.f32 %v2009_v61, %v1068_v48 }
 0x27a   : > { %v1070_v39 = vpop.f32.mrf.mxu0  ;;  %v889_v45 = vpop.f32.mrf.mxu1 }
 0x27b   : > { %2274 = vpow2.f32 %v2020_v35  ;;  %v3217_v22 = vadd.f32 %v2009_v61, %v889_v45  ;;  %v2024_v40 = vmul.f32 -1.442695, %v3215_v36 }
 0x27c   : > { %v1073_v23 = vpop.f32.mrf.mxu0  ;;  %v891_v25 = vpop.f32.mrf.mxu1 }
 0x27d   : > { %v2021_v28 = vmul.f32 -1.442695, %v3217_v22  ;;  %v3221_v29 = vadd.f32 %v2009_v61, %v1073_v23  ;;  %v1099_v61 = vsel %vm291_vm0, %v1092_v58, %v1094_v21  ;;  %v3385_v21 = vld [vmem:[%s3862_s3 + $0x30] sm:$0xff]  ;;  %v3394_v58 = vld [vmem:[%s3862_s3 + $0x28] sm:$0xff] }
 0x27e   : > { %v2273_v52 = vpop.eup %2272  ;;  %v1075_v31 = vpop.f32.mrf.mxu0 }
 0x27f   : > { %v759_v24 = vadd.f32 1.0, %v2273_v52  ;;  %2276 = vpow2.f32 %v2021_v28  ;;  %v2025_v37 = vmul.f32 -1.442695, %v3221_v29  ;;  %v2316_v28 = vld [vmem:[%s3860_s1 + $0x8] sm:$0xff]  ;;  %v2317_v52 = vld [vmem:[%s3860_s1 + $0x10] sm:$0xff]  ;;  %v2318_v31 = vld [vmem:[%s3860_s1 + $0x18] sm:$0xff] }
 0x280   : > { %2278 = vpow2.f32 %v2024_v40 }
 0x281   : > { %2280 = vrcp.f32 %v759_v24  ;;  %v2319_v24 = vld [vmem:[%s3860_s1 + $0x20] sm:$0xff] }
 0x282   : > { %2282 = vpow2.f32 %v2025_v37  ;;  %v2320_v37 = vld [vmem:[%s3860_s1 + $0x28] sm:$0xff] }
 0x288   : > { %v2275_v17 = vpop.eup %2274 }
 0x289   : > { %v899_v46 = vadd.f32 1.0, %v2275_v17  ;;  %v2321_v17 = vld [vmem:[%s3860_s1 + $0x30] sm:$0xff] }
 0x28b   : > { %2284 = vrcp.f32 %v899_v46  ;;  %v2322_v46 = vld [vmem:[%s3860_s1 + $0x38] sm:$0xff] }
 0x28c   : > { %v2277_v19 = vpop.eup %2276 }
 0x28d   : > { %v2279_v53 = vpop.eup %2278  ;;  %v900_v20 = vadd.f32 1.0, %v2277_v19  ;;  %v2323_v19 = vld [vmem:[%s3860_s1 + $0x40] sm:$0xff] }
 0x28e   : > { %v3224_v54 = vpop.eup %2280  ;;  %v1083_v4 = vadd.f32 1.0, %v2279_v53  ;;  %v2325_v53 = vld [vmem:[%s3860_s1 + $0x50] sm:$0xff] }
 0x28f   : > { %3878 = vst [vmem:[#allocation6_spill] sm:$0xff] %v3224_v54  ;;  %v2283_v55 = vpop.eup %2282  ;;  %2286 = vrcp.f32 %v900_v20  ;;  %v771_v2 = vmul.f32 %v3224_v54, %v767_v7  ;;  %v624_v7 = vpop.permute.xlu0 %623  ;;  %v2326_v20 = vld [vmem:[%s3860_s1 + $0x58] sm:$0xff] }
 0x290   : > { %v1084_v41 = vadd.f32 1.0, %v2283_v55  ;;  %v3309_v55 = vld [vmem:[%s3862_s3 + $0x78] sm:$0xff] }
 0x291   : > { %1109 = vrot.lane.b32.xlu0 %v771_v2, %s2404_s11  ;;  %v3314_v2 = vld [vmem:[%s3862_s3 + $0x70] sm:$0xff]  ;;  %1310 = vmatpush1.msra.mxu0 %v3309_v55 }
 0x292   : > { %2288 = vrcp.f32 %v1084_v41  ;;  %1311 = vmatprep.subr.mxu0 %v3865_v0  ;;  %v3322_v41 = vld [vmem:[%s3862_s3 + $0x68] sm:$0xff] }
 0x293   : > { %2290 = vrcp.f32 %v1083_v4  ;;  %1312 = vmatpush1.msra.mxu0 %v3314_v2  ;;  %v3331_v4 = vld [vmem:[%s3862_s3 + $0x60] sm:$0xff] }
 0x294   : > { %2292 = vpow2.f32 %v2013_v63  ;;  %1313 = vmatprep.subr.mxu0 %v3865_v0  ;;  %v3430_v63 = vld [vmem:[%s3862_s3 + $0x8] sm:$0xff] }
 0x295   : > { %2294 = vpow2.f32 %v2012_v6  ;;  %1314 = vmatpush1.msra.mxu0 %v3322_v41  ;;  %v3439_v6 = vld [vmem:[%s3862_s3] sm:$0xff] }
 0x296   : > { %1315 = vmatprep.subr.mxu0 %v3865_v0 }
 0x297   : > { %1316 = vmatpush1.msra.mxu0 %v3331_v4 }
 0x298   : > { %v3228_v38 = vpop.eup %2284  ;;  %1317 = vmatprep.subr.mxu0 %v3865_v0 }
 0x299   : > { %v911_v42 = vmul.f32 %v3228_v38, %v906_v60  ;;  %v3349_v60 = vld [vmem:[%s3862_s3 + $0x50] sm:$0xff]  ;;  %1318 = vmatpush1.msra.mxu0 %v3340_v57 }
 0x29a   : > { %1319 = vmatprep.subr.mxu0 %v3865_v0 }
 0x29b   : > { %1115 = vrot.lane.b32.xlu0 %v911_v42, %s2405_s12  ;;  %v3358_v42 = vld [vmem:[%s3862_s3 + $0x48] sm:$0xff]  ;;  %1320 = vmatpush1.msra.mxu0 %v3349_v60 }
 0x29c   : > { %v3232_v33 = vpop.eup %2286  ;;  %1321 = vmatprep.subr.mxu0 %v3865_v0 }
 0x29d   : > { %3879 = vst [vmem:[#allocation7_spill] sm:$0xff] %v3232_v33  ;;  %v912_v50 = vmul.f32 %v3232_v33, %v908_v18  ;;  %v2324_v18 = vld [vmem:[%s3860_s1 + $0x48] sm:$0xff]  ;;  %1322 = vmatpush1.msra.mxu0 %v3358_v42 }
 0x29e   : > { %1323 = vmatprep.subr.mxu0 %v3865_v0 }
 0x29f   : > { %v3235_v34 = vpop.eup %2288  ;;  %1117 = vrot.lane.b32.xlu1 %v912_v50, %s2405_s12  ;;  %v3367_v50 = vld [vmem:[%s3862_s3 + $0x40] sm:$0xff] }
 0x2a0   : > { %3880 = vst [vmem:[#allocation8_spill] sm:$0xff] %v3235_v34  ;;  %v1104_v26 = vmul.f32 %v3235_v34, %v1100_v49  ;;  %v3241_v51 = vpop.eup %2290  ;;  %v3376_v49 = vld [vmem:[%s3862_s3 + $0x38] sm:$0xff]  ;;  %1324 = vmatpush1.msra.mxu0 %v3367_v50 }
 0x2a1   : > { %v1103_v56 = vmul.f32 %v3241_v51, %v1099_v61  ;;  %v2293_v3 = vpop.eup %2292  ;;  %1325 = vmatprep.subr.mxu0 %v3865_v0  ;;  %v3412_v61 = vld [vmem:[%s3862_s3 + $0x18] sm:$0xff] }
 0x2a2   : > { %v614_v27 = vadd.f32 1.0, %v2293_v3  ;;  %v2295_v43 = vpop.eup %2294  ;;  %1326 = vmatpush1.msra.mxu0 %v3376_v49  ;;  %v3448_v3 = vld [vmem:[%s3862_s3 + $0xb8] sm:$0xff] }
 0x2a3   : > { %1125 = vrot.lane.b32.xlu1 %v1104_v26, %s2406_s13  ;;  %v613_v1 = vadd.f32 1.0, %v2295_v43  ;;  %1327 = vmatprep.subr.mxu0 %v3865_v0  ;;  %v3403_v26 = vld [vmem:[%s3862_s3 + $0x20] sm:$0xff] }
 0x2a4   : > { %2296 = vrcp.f32 %v614_v27  ;;  %1328 = vmatpush1.msra.mxu0 %v3385_v21  ;;  %v3457_v27 = vld [vmem:[%s3862_s3 + $0xb0] sm:$0xff] }
 0x2a5   : > { %2298 = vrcp.f32 %v613_v1  ;;  %1329 = vmatprep.subr.mxu0 %v3865_v0  ;;  %v3473_v1 = vld [vmem:[%s3862_s3 + $0xa8] sm:$0xff] }
 0x2a6   : > { %1330 = vmatpush1.msra.mxu0 %v3394_v58 }
 0x2a7   : > { %1123 = vrot.lane.b32.xlu1 %v1103_v56, %s2406_s13  ;;  %1331 = vmatprep.subr.mxu0 %v3865_v0  ;;  %v3421_v56 = vld [vmem:[%s3862_s3 + $0x10] sm:$0xff] }
 0x2a8   : > { %1332 = vmatpush1.msra.mxu0 %v3403_v26 }
 0x2a9   : > { %1333 = vmatprep.subr.mxu0 %v3865_v0 }
 0x2aa   : > { %1334 = vmatpush1.msra.mxu0 %v3412_v61 }
 0x2ab   : > { %1335 = vmatprep.subr.mxu0 %v3865_v0 }
 0x2ac   : > { %1336 = vmatpush1.msra.mxu0 %v3421_v56 }
 0x2ad   : > { %1337 = vmatprep.subr.mxu0 %v3865_v0 }
 0x2ae   : > { %1338 = vmatpush1.msra.mxu0 %v3430_v63 }
 0x2af   : > { %1339 = vmatprep.subr.mxu0 %v3865_v0 }
 0x2b0   : > { %1340 = vmatpush1.msra.mxu0 %v3439_v6 }
 0x2b1   : > { %v3249_v10 = vpop.eup %2296  ;;  %1357 = vmatprep.subr.mxu0 %v3865_v0 }
 0x2b2   : > { %v628_v59 = vmul.f32 %v3249_v10, %v624_v7  ;;  %v3252_v13 = vpop.eup %2298  ;;  %1358 = vmatpush2.msra.mxu0 %v3448_v3 }
 0x2b3   : > { %v627_v32 = vmul.f32 %v3252_v13, %v622_v5  ;;  %1359 = vmatprep.subr.mxu0 %v3865_v0  ;;  %v3481_v5 = vld [vmem:[%s3862_s3 + $0xa0] sm:$0xff] }
 0x2b4   : > { %1360 = vmatpush2.msra.mxu0 %v3457_v27 }
 0x2b5   : > { %1361 = vmatprep.subr.mxu0 %v3865_v0 }
 0x2b6   : > { %1362 = vmatpush2.msra.mxu0 %v3473_v1 }
 0x2b7   : > { %1363 = vmatprep.subr.mxu0 %v3865_v0 }
 0x2b8   : > { %1364 = vmatpush2.msra.mxu0 %v3481_v5 }
 0x2b9   : > { %1365 = vmatprep.subr.mxu0 %v3865_v0 }
 0x2d7   : > { %v1108_v8 = vpop.permute.xlu0 %1107 }
 0x2d8   : > { %v1130_v45 = vsel %vm1129_vm9, %v627_v32, %v1108_v8  ;;  %v3525_v32 = vld [vmem:[%s3862_s3 + $0x80] sm:$0xff] }
 0x303   : > { %v1110_v11 = vpop.permute.xlu0 %1109 }
 0x304   : > { %v1131_v14 = vsel %vm1129_vm9, %v628_v59, %v1110_v11  ;;  %v3494_v11 = vld [vmem:[%s3862_s3 + $0x98] sm:$0xff]  ;;  %v3503_v59 = vld [vmem:[%s3862_s3 + $0x90] sm:$0xff] }
 0x305   : > { %1366 = vmatpush2.msra.mxu0 %v3494_v11 }
 0x306   : > { %1367 = vmatprep.subr.mxu0 %v3865_v0 }
 0x307   : > { %1368 = vmatpush2.msra.mxu0 %v3503_v59 }
 0x308   : > { %1369 = vmatprep.subr.mxu0 %v3865_v0 }
 0x30d   : > { %v1116_v35 = vpop.permute.xlu0 %1115 }
 0x30e   : > { %v1133_v40 = vsel %vm1132_vm11, %v1130_v45, %v1116_v35 }
 0x311   : > { %v1118_v47 = vpop.permute.xlu1 %1117 }
 0x312   : > { %v1134_v16 = vsel %vm1132_vm11, %v1131_v14, %v1118_v47 }
 0x315   : > { %v1126_v48 = vpop.permute.xlu1 %1125 }
 0x316   : > { %v1137_v39 = vsel %vm1135_vm10, %v1134_v16, %v1126_v48  ;;  %v3516_v16 = vld [vmem:[%s3862_s3 + $0x88] sm:$0xff] }
 0x317   : > { %2067 = vmatprep.subr.mxu1 %v1137_v39  ;;  %1370 = vmatpush2.msra.mxu0 %v3516_v16 }
 0x318   : > { %2068 = vmatpush3.msra.mxu1 %v1137_v39  ;;  %1371 = vmatprep.subr.mxu0 %v3865_v0 }
 0x319   : > { %v1124_v23 = vpop.permute.xlu1 %1123  ;;  %1372 = vmatpush2.msra.mxu0 %v3525_v32 }
 0x31a   : > { %v1136_v25 = vsel %vm1135_vm10, %v1133_v40, %v1124_v23  ;;  %1613 = vmatprep.subr.mxu0 %v3865_v0 }
 0x31b   : > { %2069 = vmatprep.subr.mxu1 %v1136_v25 }
 0x31c   : > { %2070 = vmatpush3.msra.mxu1 %v1136_v25 }
 0x31d   : > { %2072 = vmatmul.mubr.msk.f32.vlgmr.msra.gmra.mxu1 %vm291_vm0, %v2316_v28  ;;  %1460 = vmatprep.subr.mxu1 %v3865_v0 }
 0x31e   : > { %2074 = vmatprep.mubr.msk.f32.mxu1 %vm291_vm0, %v2317_v52  ;;  %1461 = vmatpush1.msra.mxu1 %v3309_v55 }
 0x31f   : > { %1462 = vmatprep.subr.mxu1 %v3865_v0 }
 0x320   : > { %1463 = vmatpush1.msra.mxu1 %v3314_v2 }
 0x321   : > { %2075 = vmatmul.mubr.msk.f32.gmra.mxu1 %vm291_vm0, %v2318_v31  ;;  %1464 = vmatprep.subr.mxu1 %v3865_v0 }
 0x322   : > { %2077 = vmatprep.mubr.msk.f32.mxu1 %vm291_vm0, %v2319_v24  ;;  %1465 = vmatpush1.msra.mxu1 %v3322_v41 }
 0x323   : > { %1466 = vmatprep.subr.mxu1 %v3865_v0 }
 0x324   : > { %1467 = vmatpush1.msra.mxu1 %v3331_v4 }
 0x325   : > { %2078 = vmatmul.mubr.msk.f32.gmra.mxu1 %vm291_vm0, %v2320_v37  ;;  %1468 = vmatprep.subr.mxu1 %v3865_v0 }
 0x326   : > { %2080 = vmatprep.mubr.msk.f32.mxu1 %vm291_vm0, %v2321_v17  ;;  %1469 = vmatpush1.msra.mxu1 %v3340_v57 }
 0x327   : > { %1470 = vmatprep.subr.mxu1 %v3865_v0 }
 0x328   : > { %1471 = vmatpush1.msra.mxu1 %v3349_v60 }
 0x329   : > { %2081 = vmatmul.mubr.msk.f32.gmra.mxu1 %vm291_vm0, %v2322_v46  ;;  %1472 = vmatprep.subr.mxu1 %v3865_v0 }
 0x32a   : > { %2083 = vmatprep.mubr.msk.f32.mxu1 %vm291_vm0, %v2323_v19  ;;  %1473 = vmatpush1.msra.mxu1 %v3358_v42 }
 0x32b   : > { %1474 = vmatprep.subr.mxu1 %v3865_v0 }
 0x32c   : > { %1475 = vmatpush1.msra.mxu1 %v3367_v50 }
 0x32d   : > { %2084 = vmatmul.mubr.msk.f32.gmra.mxu1 %vm291_vm0, %v2324_v18  ;;  %1476 = vmatprep.subr.mxu1 %v3865_v0 }
 0x32e   : > { %2086 = vmatprep.mubr.msk.f32.mxu1 %vm291_vm0, %v2325_v53  ;;  %1477 = vmatpush1.msra.mxu1 %v3376_v49 }
 0x32f   : > { %1478 = vmatprep.subr.mxu1 %v3865_v0 }
 0x330   : > { %1479 = vmatpush1.msra.mxu1 %v3385_v21 }
 0x331   : > { %2087 = vmatmul.mubr.msk.f32.gmra.mxu1 %vm291_vm0, %v2326_v20  ;;  %1480 = vmatprep.subr.mxu1 %v3865_v0 }
 0x332   : > { %1481 = vmatpush1.msra.mxu1 %v3394_v58 }
 0x333   : > { %1482 = vmatprep.subr.mxu1 %v3865_v0 }
 0x334   : > { %1483 = vmatpush1.msra.mxu1 %v3403_v26 }
 0x335   : > { %1484 = vmatprep.subr.mxu1 %v3865_v0 }
 0x336   : > { %1485 = vmatpush1.msra.mxu1 %v3412_v61 }
 0x337   : > { %1486 = vmatprep.subr.mxu1 %v3865_v0 }
 0x338   : > { %1487 = vmatpush1.msra.mxu1 %v3421_v56 }
 0x339   : > { %1488 = vmatprep.subr.mxu1 %v3865_v0 }
 0x33a   : > { %1489 = vmatpush1.msra.mxu1 %v3430_v63 }
 0x33b   : > { %1490 = vmatprep.subr.mxu1 %v3865_v0 }
 0x33c   : > { %1491 = vmatpush1.msra.mxu1 %v3439_v6 }
 0x33d   : > { %1508 = vmatprep.subr.mxu1 %v3865_v0 }
 0x33e   : > { %1509 = vmatpush2.msra.mxu1 %v3448_v3 }
 0x33f   : > { %1510 = vmatprep.subr.mxu1 %v3865_v0 }
 0x340   : > { %1511 = vmatpush2.msra.mxu1 %v3457_v27 }
 0x341   : > { %1512 = vmatprep.subr.mxu1 %v3865_v0 }
 0x342   : > { %1513 = vmatpush2.msra.mxu1 %v3473_v1 }
 0x343   : > { %1514 = vmatprep.subr.mxu1 %v3865_v0 }
 0x344   : > { %1515 = vmatpush2.msra.mxu1 %v3481_v5 }
 0x345   : > { %1516 = vmatprep.subr.mxu1 %v3865_v0 }
 0x346   : > { %1517 = vmatpush2.msra.mxu1 %v3494_v11 }
 0x347   : > { %1518 = vmatprep.subr.mxu1 %v3865_v0 }
 0x348   : > { %1519 = vmatpush2.msra.mxu1 %v3503_v59 }
 0x349   : > { %1520 = vmatprep.subr.mxu1 %v3865_v0 }
 0x34a   : > { %1521 = vmatpush2.msra.mxu1 %v3516_v16 }
 0x34b   : > { %1522 = vmatprep.subr.mxu1 %v3865_v0 }
 0x34c   : > { %1523 = vmatpush2.msra.mxu1 %v3525_v32 }
 0x34d   : > { %1766 = vmatprep.subr.mxu1 %v3865_v0 }
 0x3dd   : > { %v3468_v43 = vpop.f32.mrf.mxu1 }
 0x3df   : > { %v3475_v7 = vpop.f32.mrf.mxu1 }
 0x3e1   : > { %v3486_v8 = vpop.f32.mrf.mxu1 }
 0x3e2   : > { %v2253_v19 = vpack.i.bf16 %v3486_v8, %v3468_v43 }
 0x3e3   : > { %v3497_v47 = vpop.f32.mrf.mxu1 }
 0x3e4   : > { %v2238_v46 = vpack.i.bf16 %v3497_v47, %v3475_v7 }
 0x3e5   : > { %v3508_v14 = vpop.f32.mrf.mxu1 }
 0x3e6   : > { %v2223_v24 = vpack.i.bf16 %v3508_v14, %v3486_v8 }
 0x3e7   : > { %v3519_v48 = vpop.f32.mrf.mxu1 }
 0x3e8   : > { %v2208_v35 = vpack.i.bf16 %v3519_v48, %v3497_v47 }
 0x3e9   : > { %v3532_v39 = vpop.f32.mrf.mxu1 }
 0x3ea   : > { %2209 = vrot.lane.b32.xlu0 %v2208_v35, %s2404_s11  ;;  %v2228_v37 = vpack.i.bf16 %v3532_v39, %v3508_v14  ;;  %v2233_v17 = vpack.i.bf16 %v3532_v39, %v3468_v43 }
 0x3eb   : > { %v3538_v45 = vpop.f32.mrf.mxu1 }
 0x3ec   : > { %v2213_v40 = vpack.i.bf16 %v3538_v45, %v3519_v48  ;;  %v2218_v28 = vpack.i.bf16 %v3538_v45, %v3475_v7 }
 0x3ed   : > { %v2085_v23 = vpop.f32.mrf.mxu1 }
 0x3ee   : > { %2214 = vrot.lane.b32.xlu1 %v2213_v40, %s2405_s12 }
 0x3ef   : > { %v1244_v25 = vpop.f32.mrf.mxu1 }
 0x3f1   : > { %v3546_v52 = vpop.f32.mrf.mxu1 }
 0x3f2   : > { %2219 = vrot.lane.b32.xlu1 %v2218_v28, %s2406_s13 }
 0x3f3   : > { %v1254_v31 = vpop.f32.mrf.mxu1 }
 0x3f4   : > { %1289 = vrot.lane.b32.xlu0 %v1254_v31, %s2404_s11 }
 0x3f6   : > { %2224 = vrot.lane.b32.xlu1 %v2223_v24, %s2404_s11 }
 0x3f8   : > { %1440 = vrot.lane.b32.xlu0 %v1244_v25, %s2406_s13 }
 0x3fa   : > { %1291 = vrot.lane.b32.xlu1 %v3546_v52, %s2404_s11 }
 0x3fc   : > { %2229 = vrot.lane.b32.xlu0 %v2228_v37, %s2405_s12 }
 0x3fe   : > { %1442 = vrot.lane.b32.xlu1 %v2085_v23, %s2406_s13 }
 0x400   : > { %2234 = vrot.lane.b32.xlu0 %v2233_v17, %s2406_s13 }
 0x402   : > { %2244 = vrot.lane.b32.xlu1 %v2208_v35, %s2406_s13 }
 0x404   : > { %2239 = vrot.lane.b32.xlu0 %v2238_v46, %s2405_s12 }
 0x406   : > { %1740 = vrot.lane.b32.xlu1 %v1244_v25, %s2404_s11 }
 0x408   : > { %1587 = vrot.lane.b32.xlu0 %v1244_v25, %s2405_s12 }
 0x40a   : > { %2254 = vrot.lane.b32.xlu1 %v2253_v19, %s2405_s12 }
 0x40c   : > { %2249 = vrot.lane.b32.xlu0 %v2218_v28, %s2404_s11 }
 0x40e   : > { %1589 = vrot.lane.b32.xlu1 %v2085_v23, %s2405_s12 }
 0x410   : > { %2259 = vrot.lane.b32.xlu0 %v2223_v24, %s2406_s13 }
 0x412   : > { %1593 = vrot.lane.b32.xlu1 %v1254_v31, %s2406_s13 }
 0x414   : > { %1595 = vrot.lane.b32.xlu0 %v3546_v52, %s2406_s13 }
 0x416   : > { %2264 = vrot.lane.b32.xlu1 %v2233_v17, %s2404_s11 }
 0x418   : > { %1746 = vrot.lane.b32.xlu0 %v1254_v31, %s2405_s12 }
 0x41a   : > { %1748 = vrot.lane.b32.xlu1 %v3546_v52, %s2405_s12 }
 0x41c   : > { %1742 = vrot.lane.b32.xlu0 %v2085_v23, %s2404_s11 }
 0x45c   : > { %v2210_v18 = vpop.permute.xlu0 %2209 }
 0x45d   : > { %v2211_v20 = vunpack.i.l.bf16 %v2210_v18  ;;  %v2212_v19 = vunpack.i.h.bf16 %v2210_v18 }
 0x45f   : > { %v1295_v28 = vsel %vm1129_vm9, %v3475_v7, %v2211_v20 }
 0x460   : > { %v2215_v53 = vpop.permute.xlu1 %2214 }
 0x461   : > { %v2216_v35 = vunpack.i.l.bf16 %v2215_v53  ;;  %v2217_v7 = vunpack.i.h.bf16 %v2215_v53 }
 0x463   : > { %v1297_v46 = vsel %vm1132_vm11, %v1295_v28, %v2216_v35  ;;  %v3881_v35 = vmov 0.0  }
 0x464   : > { %v2220_v40 = vpop.permute.xlu1 %2219 }
 0x465   : > { %v2222_v24 = vunpack.i.h.bf16 %v2220_v40  ;;  %v2221_v37 = vunpack.i.l.bf16 %v2220_v40 }
 0x466   : > { %v1290_v17 = vpop.permute.xlu0 %1289 }
 0x467   : > { %v1446_v0 = vsel %vm1129_vm9, %v2221_v37, %v3497_v47  ;;  %v1301_v54 = vsel %vm1129_vm9, %v1244_v25, %v1290_v17  ;;  %v1299_v9 = vsel %vm1135_vm10, %v1297_v46, %v2222_v24 }
 0x468   : > { %v2225_v34 = vpop.permute.xlu1 %2224  ;;  %2038 = vmatprep.mubr.msk.f32.mxu0 %vm1132_vm11, %v1301_v54  ;;  %v1448_v33 = vsel %vm1132_vm11, %v1446_v0, %v2212_v19 }
 0x469   : > { %1374 = vmatmul.mubr.f32.vlgmr.msra.gmra.mxu0 %v1299_v9  ;;  %v1450_v25 = vsel %vm1135_vm10, %v1448_v33, %v2217_v7  ;;  %v2226_v9 = vunpack.i.l.bf16 %v2225_v34  ;;  %v2227_v28 = vunpack.i.h.bf16 %v2225_v34 }
 0x46a   : > { %1614 = vmatpush1.msra.mxu0 %v3309_v55  ;;  %v1441_v20 = vpop.permute.xlu0 %1440 }
 0x46b   : > { %1615 = vmatprep.subr.mxu0 %v3881_v35  ;;  %v1452_v18 = vsel %vm1129_vm9, %v1441_v20, %v1254_v31 }
 0x46c   : > { %1616 = vmatpush1.msra.mxu0 %v3314_v2  ;;  %v1292_v47 = vpop.permute.xlu1 %1291  ;;  %2040 = vmatprep.mubr.msk.f32.mxu1 %vm1132_vm11, %v1452_v18 }
 0x46d   : > { %v1302_v54 = vsel %vm1129_vm9, %v2085_v23, %v1292_v47  ;;  %1617 = vmatprep.subr.mxu0 %v3881_v35  ;;  %1525 = vmatmul.mubr.f32.vlgmr.msra.gmra.mxu1 %v1450_v25 }
 0x46e   : > { %1618 = vmatpush1.msra.mxu0 %v3322_v41  ;;  %1767 = vmatpush1.msra.mxu1 %v3309_v55  ;;  %v2230_v0 = vpop.permute.xlu0 %2229 }
 0x46f   : > { %2039 = vmatprep.mubr.msk.f32.mxu0 %vm1132_vm11, %v1302_v54  ;;  %1619 = vmatprep.subr.mxu0 %v3881_v35  ;;  %v2231_v31 = vunpack.i.l.bf16 %v2230_v0  ;;  %v2232_v24 = vunpack.i.h.bf16 %v2230_v0 }
 0x470   : > { %1768 = vmatprep.subr.mxu1 %v3881_v35  ;;  %1620 = vmatpush1.msra.mxu0 %v3331_v4  ;;  %v1443_v33 = vpop.permute.xlu1 %1442 }
 0x471   : > { %1769 = vmatpush1.msra.mxu1 %v3314_v2  ;;  %v1453_v23 = vsel %vm1129_vm9, %v1443_v33, %v3546_v52  ;;  %1621 = vmatprep.subr.mxu0 %v3881_v35  ;;  %v1296_v52 = vsel %vm1129_vm9, %v3468_v43, %v2226_v9 }
 0x472   : > { %1770 = vmatprep.subr.mxu1 %v3881_v35  ;;  %1622 = vmatpush1.msra.mxu0 %v3340_v57  ;;  %v2235_v55 = vpop.permute.xlu0 %2234 }
 0x473   : > { %1771 = vmatpush1.msra.mxu1 %v3322_v41  ;;  %2041 = vmatprep.mubr.msk.f32.mxu1 %vm1132_vm11, %v1453_v23  ;;  %v2237_v53 = vunpack.i.h.bf16 %v2235_v55  ;;  %v2236_v40 = vunpack.i.l.bf16 %v2235_v55  ;;  %v1298_v41 = vsel %vm1132_vm11, %v1296_v52, %v2231_v31 }
 0x474   : > { %1623 = vmatprep.subr.mxu0 %v3881_v35  ;;  %1772 = vmatprep.subr.mxu1 %v3881_v35  ;;  %v3616_v2 = vpop.permute.xlu1 %2244 }
 0x475   : > { %1624 = vmatpush1.msra.mxu0 %v3349_v60  ;;  %1773 = vmatpush1.msra.mxu1 %v3331_v4  ;;  %v1447_v37 = vsel %vm1129_vm9, %v2236_v40, %v3486_v8  ;;  %v1300_v46 = vsel %vm1135_vm10, %v1298_v41, %v2237_v53  ;;  %v2247_v25 = vunpack.i.h.bf16 %v3616_v2 }
 0x476   : > { %1625 = vmatprep.subr.mxu0 %v3881_v35  ;;  %1774 = vmatprep.subr.mxu1 %v3881_v35  ;;  %v3627_v34 = vpop.permute.xlu0 %2239  ;;  %v1449_v43 = vsel %vm1132_vm11, %v1447_v37, %v2227_v28 }
 0x477   : > { %1626 = vmatpush1.msra.mxu0 %v3358_v42  ;;  %1775 = vmatpush1.msra.mxu1 %v3340_v57  ;;  %v1451_v4 = vsel %vm1135_vm10, %v1449_v43, %v2232_v24 }
 0x478   : > { %1627 = vmatprep.subr.mxu0 %v3881_v35  ;;  %1776 = vmatprep.subr.mxu1 %v3881_v35  ;;  %v1741_v8 = vpop.permute.xlu1 %1740 }
 0x479   : > { %1379 = vmatmul.mubr.f32.gmra.mxu0 %v1300_v46  ;;  %1777 = vmatpush1.msra.mxu1 %v3349_v60 }
 0x47a   : > { %1628 = vmatpush1.msra.mxu0 %v3367_v50  ;;  %1530 = vmatmul.mubr.f32.gmra.mxu1 %v1451_v4  ;;  %v1588_v17 = vpop.permute.xlu0 %1587 }
 0x47b   : > { %1629 = vmatprep.subr.mxu0 %v3881_v35  ;;  %1778 = vmatprep.subr.mxu1 %v3881_v35 }
 0x47c   : > { %1630 = vmatpush1.msra.mxu0 %v3376_v49  ;;  %1779 = vmatpush1.msra.mxu1 %v3358_v42  ;;  %v3642_v57 = vpop.permute.xlu1 %2254 }
 0x47d   : > { %1631 = vmatprep.subr.mxu0 %v3881_v35  ;;  %1780 = vmatprep.subr.mxu1 %v3881_v35  ;;  %v2257_v54 = vunpack.i.h.bf16 %v3642_v57 }
 0x47e   : > { %1632 = vmatpush1.msra.mxu0 %v3385_v21  ;;  %1781 = vmatpush1.msra.mxu1 %v3367_v50  ;;  %v3648_v60 = vpop.permute.xlu0 %2249 }
 0x47f   : > { %1633 = vmatprep.subr.mxu0 %v3881_v35  ;;  %1782 = vmatprep.subr.mxu1 %v3881_v35  ;;  %v2252_v7 = vunpack.i.h.bf16 %v3648_v60 }
 0x480   : > { %1634 = vmatpush1.msra.mxu0 %v3394_v58  ;;  %1783 = vmatpush1.msra.mxu1 %v3376_v49  ;;  %v3654_v42 = vpop.permute.xlu1 %1589 }
 0x481   : > { %1635 = vmatprep.subr.mxu0 %v3881_v35  ;;  %1784 = vmatprep.subr.mxu1 %v3881_v35 }
 0x482   : > { %1636 = vmatpush1.msra.mxu0 %v3403_v26  ;;  %1785 = vmatpush1.msra.mxu1 %v3385_v21  ;;  %v3660_v50 = vpop.permute.xlu0 %2259 }
 0x483   : > { %1637 = vmatprep.subr.mxu0 %v3881_v35  ;;  %1786 = vmatprep.subr.mxu1 %v3881_v35  ;;  %v2261_v20 = vunpack.i.l.bf16 %v3660_v50  ;;  %v2262_v23 = vunpack.i.h.bf16 %v3660_v50  ;;  %v2328_v50 = vld [vmem:[%s2499_s9 + $0x10] sm:$0xff] }
 0x484   : > { %1638 = vmatpush1.msra.mxu0 %v3412_v61  ;;  %1787 = vmatpush1.msra.mxu1 %v3394_v58  ;;  %v1594_v49 = vpop.permute.xlu1 %1593 }
 0x485   : > { %1639 = vmatprep.subr.mxu0 %v3881_v35  ;;  %1788 = vmatprep.subr.mxu1 %v3881_v35  ;;  %v1605_v19 = vsel %vm1129_vm9, %v1588_v17, %v1594_v49  ;;  %v2329_v49 = vld [vmem:[%s2499_s9 + $0x8] sm:$0xff] }
 0x486   : > { %1640 = vmatpush1.msra.mxu0 %v3421_v56  ;;  %1789 = vmatpush1.msra.mxu1 %v3403_v26  ;;  %v3670_v21 = vpop.permute.xlu0 %1595 }
 0x487   : > { %1641 = vmatprep.subr.mxu0 %v3881_v35  ;;  %1790 = vmatprep.subr.mxu1 %v3881_v35  ;;  %v1606_v33 = vsel %vm1129_vm9, %v3654_v42, %v3670_v21  ;;  %v2327_v42 = vld [vmem:[%s2499_s9] sm:$0xff]  ;;  %v2330_v21 = vld [vmem:[%s2499_s9 + $0x18] sm:$0xff]  ;;  %s2410_s9 = smov 120  }
 0x488   : > { %1642 = vmatpush1.msra.mxu0 %v3430_v63  ;;  %1791 = vmatpush1.msra.mxu1 %v3412_v61  ;;  %v2241_v61 = vunpack.i.l.bf16 %v3627_v34 }
 0x489   : > { %1643 = vmatprep.subr.mxu0 %v3881_v35  ;;  %1792 = vmatprep.subr.mxu1 %v3881_v35 }
 0x48a   : > { %2042 = vmatprep.mubr.msk.f32.mxu0 %vm1132_vm11, %v1605_v19  ;;  %1644 = vmatpush1.msra.mxu0 %v3439_v6  ;;  %v1747_v58 = vpop.permute.xlu0 %1746 }
 0x48b   : > { %1793 = vmatpush1.msra.mxu1 %v3421_v56  ;;  %1661 = vmatprep.subr.mxu0 %v3881_v35  ;;  %v1758_v26 = vsel %vm1129_vm9, %v1741_v8, %v1747_v58  ;;  %v2246_v56 = vunpack.i.l.bf16 %v3616_v2 }
 0x48c   : > { %1794 = vmatprep.subr.mxu1 %v3881_v35  ;;  %1662 = vmatpush2.msra.mxu0 %v3448_v3 }
 0x48d   : > { %1795 = vmatpush1.msra.mxu1 %v3430_v63  ;;  %1663 = vmatprep.subr.mxu0 %v3881_v35  ;;  %v2251_v63 = vunpack.i.l.bf16 %v3648_v60 }
 0x48e   : > { %1796 = vmatprep.subr.mxu1 %v3881_v35  ;;  %1664 = vmatpush2.msra.mxu0 %v3457_v27  ;;  %v1743_v31 = vpop.permute.xlu0 %1742 }
 0x48f   : > { %1797 = vmatpush1.msra.mxu1 %v3439_v6  ;;  %1665 = vmatprep.subr.mxu0 %v3881_v35  ;;  %v2265_v6 = vpop.permute.xlu1 %2264 }
 0x490   : > { %1814 = vmatprep.subr.mxu1 %v3881_v35  ;;  %2044 = vmatprep.mubr.msk.f32.mxu1 %vm1132_vm11, %v1758_v26  ;;  %v2266_v47 = vunpack.i.l.bf16 %v2265_v6  ;;  %v2267_v0 = vunpack.i.h.bf16 %v2265_v6 }
 0x491   : > { %1666 = vmatpush2.msra.mxu0 %v3473_v1  ;;  %1815 = vmatpush2.msra.mxu1 %v3448_v3  ;;  %v2242_v3 = vunpack.i.h.bf16 %v3627_v34 }
 0x492   : > { %1667 = vmatprep.subr.mxu0 %v3881_v35  ;;  %1816 = vmatprep.subr.mxu1 %v3881_v35 }
 0x493   : > { %1668 = vmatpush2.msra.mxu0 %v3481_v5  ;;  %1817 = vmatpush2.msra.mxu1 %v3457_v27  ;;  %v1599_v27 = vsel %vm1129_vm9, %v2241_v61, %v2246_v56  ;;  %v1752_v18 = vsel %vm1129_vm9, %v2251_v63, %v2242_v3  ;;  %v1749_v53 = vpop.permute.xlu1 %1748 }
 0x494   : > { %1669 = vmatprep.subr.mxu0 %v3881_v35  ;;  %1818 = vmatprep.subr.mxu1 %v3881_v35  ;;  %v1759_v2 = vsel %vm1129_vm9, %v1743_v31, %v1749_v53 }
 0x495   : > { %1670 = vmatpush2.msra.mxu0 %v3494_v11  ;;  %1819 = vmatpush2.msra.mxu1 %v3473_v1  ;;  %v2256_v1 = vunpack.i.l.bf16 %v3642_v57 }
 0x496   : > { %1671 = vmatprep.subr.mxu0 %v3881_v35  ;;  %1820 = vmatprep.subr.mxu1 %v3881_v35 }
 0x497   : > { %1672 = vmatpush2.msra.mxu0 %v3503_v59  ;;  %1821 = vmatpush2.msra.mxu1 %v3481_v5  ;;  %v1601_v5 = vsel %vm1132_vm11, %v1599_v27, %v3519_v48  ;;  %v1754_v48 = vsel %vm1132_vm11, %v1752_v18, %v2247_v25 }
 0x498   : > { %1673 = vmatprep.subr.mxu0 %v3881_v35  ;;  %1822 = vmatprep.subr.mxu1 %v3881_v35  ;;  %v1603_v9 = vsel %vm1135_vm10, %v1601_v5, %v2252_v7  ;;  %v1756_v28 = vsel %vm1135_vm10, %v1754_v48, %v3538_v45  ;;  %v1404_v48 = vsub.f32 1.0, %v3252_v13 }
 0x499   : > { %1674 = vmatpush2.msra.mxu0 %v3516_v16  ;;  %1823 = vmatpush2.msra.mxu1 %v3494_v11  ;;  %v1600_v11 = vsel %vm1129_vm9, %v2256_v1, %v2261_v20 }
 0x49a   : > { %1675 = vmatprep.subr.mxu0 %v3881_v35  ;;  %1824 = vmatprep.subr.mxu1 %v3881_v35  ;;  %v1602_v55 = vsel %vm1132_vm11, %v1600_v11, %v3508_v14 }
 0x49b   : > { %1676 = vmatpush2.msra.mxu0 %v3525_v32  ;;  %1825 = vmatpush2.msra.mxu1 %v3503_v59  ;;  %v1753_v59 = vsel %vm1129_vm9, %v2266_v47, %v2257_v54  ;;  %v1604_v40 = vsel %vm1135_vm10, %v1602_v55, %v2267_v0 }
 0x49c   : > { %1678 = vmatmul.mubr.f32.vlgmr.msra.gmra.mxu0 %v1603_v9  ;;  %1826 = vmatprep.subr.mxu1 %v3881_v35 }
 0x49d   : > { %2043 = vmatprep.mubr.msk.f32.mxu0 %vm1132_vm11, %v1606_v33  ;;  %1827 = vmatpush2.msra.mxu1 %v3516_v16  ;;  %v1755_v16 = vsel %vm1132_vm11, %v1753_v59, %v2262_v23 }
 0x49e   : > { %1828 = vmatprep.subr.mxu1 %v3881_v35  ;;  %v1757_v35 = vsel %vm1135_vm10, %v1755_v16, %v3532_v39 }
 0x49f   : > { %1829 = vmatpush2.msra.mxu1 %v3525_v32 }
 0x4a0   : > { %1683 = vmatmul.mubr.f32.gmra.mxu0 %v1604_v40  ;;  %1831 = vmatmul.mubr.f32.vlgmr.msra.gmra.mxu1 %v1756_v28 }
 0x4a1   : > { %2045 = vmatprep.mubr.msk.f32.mxu1 %vm1132_vm11, %v1759_v2  ;;  %v1405_v2 = vsub.f32 1.0, %v3249_v10 }
 0x4a4   : > { %1836 = vmatmul.mubr.f32.gmra.mxu1 %v1757_v35 }
 0x529   : > { %v1375_v14 = vpop.f32.mrf.mxu0 }
 0x52a   : > { %1386 = vrot.lane.b32.xlu0 %v1375_v14, %s2405_s12 }
 0x52b   : > { %v1377_v32 = vpop.f32.mrf.mxu0 }
 0x52d   : > { %v1526_v52 = vpop.f32.mrf.mxu1 }
 0x52f   : > { %v1528_v24 = vpop.f32.mrf.mxu1 }
 0x539   : > { %v1380_v41 = vpop.f32.mrf.mxu0 }
 0x53a   : > { %1388 = vrot.lane.b32.xlu1 %v1380_v41, %s2405_s12  ;;  %v1531_v45 = vpop.f32.mrf.mxu1 }
 0x53b   : > { %v1382_v37 = vpop.f32.mrf.mxu0 }
 0x53c   : > { %v1533_v34 = vpop.f32.mrf.mxu1 }
 0x53d   : > { %v1868_v34 = vsub.f32 1.0, %v3241_v51 }
 0x55c   : > { %v1679_v46 = vpop.f32.mrf.mxu0 }
 0x55d   : > { %1690 = vrot.lane.b32.xlu0 %v1679_v46, %s2405_s12 }
 0x55e   : > { %v1681_v43 = vpop.f32.mrf.mxu0 }
 0x55f   : > { %v3882_v43 = vld [vmem:[#allocation7_spill] sm:$0xff] }
 0x560   : > { %v1684_v4 = vpop.f32.mrf.mxu0  ;;  %v1832_v39 = vpop.f32.mrf.mxu1 }
 0x561   : > { %1843 = vrot.lane.b32.xlu0 %v1832_v39, %s2405_s12  ;;  %1692 = vrot.lane.b32.xlu1 %v1684_v4, %s2405_s12  ;;  %v1709_v4 = vsub.f32 1.0, %v3882_v43 }
 0x562   : > { %v1686_v8 = vpop.f32.mrf.mxu0  ;;  %v1834_v17 = vpop.f32.mrf.mxu1 }
 0x564   : > { %v1837_v57 = vpop.f32.mrf.mxu1 }
 0x565   : > { %1537 = vrot.lane.b32.xlu0 %v1526_v52, %s2405_s12  ;;  %1845 = vrot.lane.b32.xlu1 %v1837_v57, %s2405_s12  ;;  %v1708_v52 = vsub.f32 1.0, %v3228_v38 }
 0x566   : > { %v1839_v60 = vpop.f32.mrf.mxu1 }
 0x569   : > { %1396 = vrot.lane.b32.xlu0 %v2327_v42, %s2407_s8  ;;  %1539 = vrot.lane.b32.xlu1 %v1531_v45, %s2405_s12 }
 0x56d   : > { %1700 = vrot.lane.b32.xlu0 %v2327_v42, %s2408_s10  ;;  %1398 = vrot.lane.b32.xlu1 %v2328_v50, %s2407_s8 }
 0x571   : > { %1702 = vrot.lane.b32.xlu1 %v2328_v50, %s2408_s10  ;;  %1853 = vrot.lane.b32.xlu0 %v2327_v42, %s2409_s14 }
 0x575   : > { %1855 = vrot.lane.b32.xlu1 %v2329_v49, %s2409_s14  ;;  %1857 = vrot.lane.b32.xlu0 %v2328_v50, %s2409_s14 }
 0x579   : > { %1859 = vrot.lane.b32.xlu1 %v2330_v21, %s2409_s14 }
 0x59c   : > { %v1387_v19 = vpop.permute.xlu0 %1386 }
 0x59d   : > { %v1392_v58 = vadd.f32 %v1387_v19, %v3196_v62 }
 0x59f   : > { %2300 = vtanh.f32 %v1392_v58 }
 0x5ac   : > { %v2301_v26 = vpop.eup %2300  ;;  %v1389_v61 = vpop.permute.xlu1 %1388 }
 0x5ad   : > { %v1393_v56 = vadd.f32 %v1389_v61, %v3210_v30  ;;  %1408 = vrot.lane.b32.xlu0 %v2301_v26, %s2406_s13 }
 0x5af   : > { %2302 = vtanh.f32 %v1393_v56 }
 0x5bc   : > { %v2303_v63 = vpop.eup %2302 }
 0x5bd   : > { %1410 = vrot.lane.b32.xlu1 %v2303_v63, %s2406_s13  ;;  %v3884_v63 = vld [vmem:[#allocation5_spill] sm:$0xff] }
 0x5cf   : > { %v1691_v6 = vpop.permute.xlu0 %1690 }
 0x5d0   : > { %v1696_v3 = vadd.f32 %v1691_v6, %v3212_v15  ;;  %v1555_v6 = vsub.f32 1.0, %v3884_v63 }
 0x5d2   : > { %2304 = vtanh.f32 %v1696_v3 }
 0x5d3   : > { %v1844_v27 = vpop.permute.xlu0 %1843  ;;  %v1693_v7 = vpop.permute.xlu1 %1692 }
 0x5d4   : > { %v1849_v20 = vadd.f32 %v1844_v27, %v3215_v36  ;;  %v1697_v62 = vadd.f32 %v1693_v7, %v3217_v22 }
 0x5d6   : > { %2306 = vtanh.f32 %v1849_v20 }
 0x5d7   : > { %2308 = vtanh.f32 %v1697_v62  ;;  %v1538_v1 = vpop.permute.xlu0 %1537  ;;  %v1846_v30 = vpop.permute.xlu1 %1845  ;;  %v3885_v62 = vld [vmem:[#allocation6_spill] sm:$0xff] }
 0x5d8   : > { %v1850_v18 = vadd.f32 %v1846_v30, %v3221_v29  ;;  %v1543_v47 = vadd.f32 %v1538_v1, %v3198_v44  ;;  %v1556_v1 = vsub.f32 1.0, %v3885_v62 }
 0x5da   : > { %2310 = vtanh.f32 %v1850_v18 }
 0x5db   : > { %v1540_v25 = vpop.permute.xlu1 %1539  ;;  %2312 = vtanh.f32 %v1543_v47 }
 0x5dc   : > { %v1544_v15 = vadd.f32 %v1540_v25, %v3207_v12  ;;  %v1397_v12 = vpop.permute.xlu0 %1396 }
 0x5dd   : > { %v1402_v23 = vmul.f32 %v3252_v13, %v1397_v12 }
 0x5de   : > { %2314 = vtanh.f32 %v1544_v15 }
 0x5df   : > { %v2305_v5 = vpop.eup %2304  ;;  %v1399_v11 = vpop.permute.xlu1 %1398 }
 0x5e0   : > { %1712 = vrot.lane.b32.xlu0 %v2305_v5, %s2406_s13  ;;  %v1701_v0 = vpop.permute.xlu0 %1700  ;;  %v1403_v35 = vmul.f32 %v3249_v10, %v1399_v11 }
 0x5e1   : > { %v1706_v13 = vmul.f32 %v3228_v38, %v1701_v0 }
 0x5e3   : > { %v2307_v54 = vpop.eup %2306  ;;  %v1703_v31 = vpop.permute.xlu1 %1702 }
 0x5e4   : > { %v2309_v36 = vpop.eup %2308  ;;  %1872 = vrot.lane.b32.xlu0 %v2307_v54, %s2406_s13  ;;  %v1854_v9 = vpop.permute.xlu0 %1853  ;;  %v1707_v17 = vmul.f32 %v3882_v43, %v1703_v31 }
 0x5e5   : > { %1714 = vrot.lane.b32.xlu1 %v2309_v36, %s2406_s13 }
 0x5e7   : > { %v2311_v22 = vpop.eup %2310  ;;  %v1856_v40 = vpop.permute.xlu1 %1855 }
 0x5e8   : > { %1547 = vrot.lane.b32.xlu0 %v2327_v42, %s2410_s9  ;;  %v2313_v44 = vpop.eup %2312  ;;  %v1858_v33 = vpop.permute.xlu0 %1857  ;;  %v1862_v45 = vsel %vm1861_vm12, %v1854_v9, %v1856_v40 }
 0x5e9   : > { %1874 = vrot.lane.b32.xlu1 %v2311_v22, %s2406_s13  ;;  %v1866_v10 = vmul.f32 %v3241_v51, %v1862_v45 }
 0x5eb   : > { %v2315_v29 = vpop.eup %2314  ;;  %v1860_v28 = vpop.permute.xlu1 %1859 }
 0x5ec   : > { %1559 = vrot.lane.b32.xlu0 %v2313_v44, %s2406_s13  ;;  %v1863_v38 = vsel %vm1861_vm12, %v1858_v33, %v1860_v28 }
 0x5ed   : > { %1549 = vrot.lane.b32.xlu1 %v2328_v50, %s2410_s9  ;;  %v3883_v50 = vld [vmem:[#allocation8_spill] sm:$0xff] }
 0x5ee   : > { %v1869_v49 = vsub.f32 1.0, %v3883_v50  ;;  %v1867_v19 = vmul.f32 %v3883_v50, %v1863_v38 }
 0x5f1   : > { %1561 = vrot.lane.b32.xlu1 %v2315_v29, %s2406_s13 }
 0x61f   : > { %v1409_v59 = vpop.permute.xlu0 %1408 }
 0x620   : > { %v1414_v55 = vmul.f32 %v1409_v59, %v1404_v48 }
 0x622   : > { %v1416_v53 = vadd.f32 %v1414_v55, %v1402_v23 }
 0x624   : > { %1884 = vrot.lane.b32.xlu0 %v1416_v53, %s2406_s13 }
 0x62f   : > { %v1411_v16 = vpop.permute.xlu1 %1410 }
 0x630   : > { %v1415_v14 = vmul.f32 %v1411_v16, %v1405_v2 }
 0x632   : > { %v1417_v32 = vadd.f32 %v1415_v14, %v1403_v35 }
 0x634   : > { %1886 = vrot.lane.b32.xlu1 %v1417_v32, %s2406_s13  ;;  %s215_s13 = sand.u32 1, %s2383_s19  }
 0x635   : > { %s1994_s15 = sshll.u32 %s215_s13, 4  ;;  %s3819_s22 = scalar_lea.sflag [#allocation3], %s215_s13 }
 0x652   : > { %v1713_v24 = vpop.permute.xlu0 %1712 }
 0x653   : > { %v1718_v41 = vmul.f32 %v1713_v24, %v1708_v52 }
 0x655   : > { %v1720_v37 = vadd.f32 %v1718_v41, %v1706_v13 }
 0x656   : > { %v1873_v46 = vpop.permute.xlu0 %1872 }
 0x657   : > { %v1878_v39 = vmul.f32 %v1873_v46, %v1868_v34  ;;  %v1715_v8 = vpop.permute.xlu1 %1714  ;;  %1892 = vrot.lane.b32.xlu0 %v1720_v37, %s2404_s11 }
 0x658   : > { %v1719_v57 = vmul.f32 %v1715_v8, %v1709_v4 }
 0x659   : > { %v1880_v60 = vadd.f32 %v1878_v39, %v1866_v10 }
 0x65a   : > { %v1721_v42 = vadd.f32 %v1719_v57, %v1707_v17  ;;  %v1548_v26 = vpop.permute.xlu0 %1547 }
 0x65b   : > { %v1875_v21 = vpop.permute.xlu1 %1874  ;;  %1900 = vrot.lane.b32.xlu0 %v1880_v60, %s2405_s12  ;;  %v1553_v20 = vmul.f32 %v3884_v63, %v1548_v26 }
 0x65c   : > { %v1879_v51 = vmul.f32 %v1875_v21, %v1869_v49  ;;  %1894 = vrot.lane.b32.xlu1 %v1721_v42, %s2404_s11  ;;  %s217_s11 = scalar_lea.vmem [#allocation2], %s1994_s15 }
 0x65e   : > { %v1881_v58 = vadd.f32 %v1879_v51, %v1867_v19  ;;  %v1560_v56 = vpop.permute.xlu0 %1559 }
 0x65f   : > { %v1550_v61 = vpop.permute.xlu1 %1549  ;;  %v1565_v27 = vmul.f32 %v1560_v56, %v1555_v6 }
 0x660   : > { %1902 = vrot.lane.b32.xlu1 %v1881_v58, %s2405_s12  ;;  %v1554_v15 = vmul.f32 %v3885_v62, %v1550_v61  ;;  %s1928_s12 = sshll.u32 %s217_s11, 4  ;;  %s3810_s12 = int_to_ptr.vmem [resolvable:$true] %s1928_s12 }
 0x661   : > { %v1567_v18 = vadd.f32 %v1565_v27, %v1553_v20  ;;  %s2331_s30 = scalar_lea.vmem %s3810_s12, 256  ;;  %p2338_p0 = scmp.lt.s32.totalorder %s3810_s12, %s2336_s25 }
 0x662   : > { %p2332_p11 = scmp.ne.s32.totalorder %s3810_s12, %s2331_s30  ;;  %p2339_p1 = scmp.lt.s32.totalorder %s2337_s7, %s2331_s30 }
 0x663   : > { %v1562_v7 = vpop.permute.xlu1 %1561 }
 0x664   : > { %v1566_v25 = vmul.f32 %v1562_v7, %v1556_v1  ;;  %p2333_p12 = pnand %p2332_p11, %p2482_p5  ;;  %p2340_p2 = por %p2339_p1, %p2338_p0 }
 0x666   : > { %v1568_v29 = vadd.f32 %v1566_v25, %v1554_v15  ;;  %p2334_p13 = pneg %p2333_p12 }
 0x668   : > { %p2341_p3 = pnand %p2340_p2, %p2334_p13 }
 0x696   : > { %v1885_v3 = vpop.permute.xlu0 %1884 }
 0x697   : > { %v1906_v5 = vsel %vm1129_vm9, %v1885_v3, %v1567_v18 }
 0x6a6   : > { %v1887_v47 = vpop.permute.xlu1 %1886 }
 0x6a7   : > { %v1907_v12 = vsel %vm1129_vm9, %v1887_v47, %v1568_v29 }
 0x6c9   : > { %v1893_v30 = vpop.permute.xlu0 %1892 }
 0x6ca   : > { %v1908_v54 = vsel %vm1132_vm11, %v1906_v5, %v1893_v30 }
 0x6cd   : > { %v1901_v36 = vpop.permute.xlu0 %1900 }
 0x6ce   : > { %v1910_v22 = vsel %vm1135_vm10, %v1908_v54, %v1901_v36  ;;  %v1895_v44 = vpop.permute.xlu1 %1894 }
 0x6cf   : > { %1912 = vst [vmem:[%s217_s11] sm:$0xff] %v1910_v22  ;;  %v1909_v0 = vsel %vm1132_vm11, %v1907_v12, %v1895_v44 }
 0x6d2   : > { %v1903_v9 = vpop.permute.xlu1 %1902 }
 0x6d3   : > { %v1911_v11 = vsel %vm1135_vm10, %v1909_v0, %v1903_v9 }
 0x6d4   : > { %1913 = vst [vmem:[%s217_s11 + $0x8] sm:$0xff] %v1911_v11 }
 0x6d5   : > { %2344 = shalt.err (!%p2341_p3)
}
 0x6d6   : > { %s2345_s8 = scalar_lea.hbm %s3815_s26, 256  ;;  %s2349_s9 = scalar_lea.hbm %s3864_s5, 512 }
 0x6d7   : > { %p2346_p4 = scmp.ne.s32.totalorder %s3815_s26, %s2345_s8  ;;  %p2350_p9 = scmp.lt.s32.totalorder %s3815_s26, %s3864_s5 }
 0x6d8   : > { %p2351_p10 = scmp.lt.s32.totalorder %s2349_s9, %s2345_s8 }
 0x6d9   : > { %p2347_p7 = pnand %p2346_p4, %p2482_p5 }
 0x6da   : > { %p2352_p11 = por %p2351_p10, %p2350_p9 }
 0x6db   : > { %p2348_p8 = pneg %p2347_p7 }
 0x6dd   : > { %p2353_p12 = pnand %p2352_p11, %p2348_p8 }
 0x6df   : > { %2356 = shalt.err (!%p2353_p12)
}
 0x6e0   : > { %s2412_s11 = smov 128   ;;  %s2413_s16 = smov 8  }
 0x6e1   : > { %2089 = dma.vmem_to_hbm [thread:$0]  (%p2482_p5), %s3810_s12, 256, %s3815_s26, %s3819_s22, %s2412_s11, %s2412_s11, %s2413_s16  }
 0x6e2 PF: > { %p2095_p13 = scmp.ge.s32.totalorder %s2391_s21, 2  ;;  %s1943_s17 = sand.u32 1, %s2379_s18  }
 0x6e3   : > { %s1944_s23 = scalar_lea.sflag [#allocation3], %s1943_s17 }
 0x6e4   : > { %p2092_p0 = pnand %p2095_p13, %p2486_p6 }
 0x6e6   : > { %p2093_p1 = pneg %p2092_p0 }
 0x6e8   : > { %2374 = dma.done.wait (%p2093_p1), %s1944_s23, 256  }
 0x6e9   : > { %2376 = vsyncadd (%p2093_p1), %s1944_s23, 4294967040  ;;  %p15_p2 = scmp.ge.s32.totalorder %s2469_s24, 4   ;;  %s3886_s18 = smov %s2383_s19 }
 0x6ea   : > { %s3887_s19 = smov %s2387_s20  ;;  %s3888_s20 = smov %s2480_s27 }
 0x6eb   : > { %s3889_s21 = smov %s2469_s24  ;;  %17 = sbr.rel (!%p15_p2) target bundleno = 3 (0x3), region = 75 }
 0x6f0   :  { %1949 = vsyncpa [#allocation3], 1 }
 0x6f1   :  { %1951 = vsyncpa [#allocation3 + $0x1], 1 }

</bundles_post_ra>
